<compile_context>
chip_gen: v5e
topology: v5e:2x2
jax: 0.10.0
libtpu: 0.0.40
codegen_flags: <defaults>
</compile_context>

<pallas_src>
import functools

import jax
import jax.numpy as jnp
from jax.experimental import pallas as pl
from jax.experimental.pallas import tpu as pltpu


# ----------------------------- encoder kernel ------------------------------
def _enc_kernel(x_ref, w_ref, b_ref, o_ref, *, H, W):
    # x_ref: (1, (H+2)*(W+2)+2, Cin) zero-padded, channels-last, flattened image
    # w_ref: (9, Cin, Cout) per-tap weights; b_ref: (1, Cout)
    # o_ref: (1, H*(W+2), Cout) conv output in padded-row-stride layout
    Wp = W + 2
    rows = H * Wp
    cout = o_ref.shape[2]
    acc = jnp.zeros((rows, cout), jnp.float32)
    for kh in range(3):
        for kw in range(3):
            off = kh * Wp + kw
            slab = x_ref[0, off:off + rows, :]            # (H*Wp, Cin), already 2D
            acc = acc + jnp.dot(slab, w_ref[kh * 3 + kw],
                                preferred_element_type=jnp.float32)
    o_ref[0] = (acc + b_ref[...]).astype(o_ref.dtype)


def encoder_conv3x3(x_nchw, w_enc, b_enc):
    """3x3 conv, padding=1 (NCHW semantics). Shifted matmuls inside the kernel.

    Returns feat of shape (B, H*(W+2), Cout); valid pixel (ih, iw) lives at row
    ih*(W+2)+iw (the extra columns are never read downstream).
    """
    B, Cin, H, W = x_nchw.shape
    Cout = w_enc.shape[0]
    Wp = W + 2
    x_nhwc = jnp.transpose(x_nchw, (0, 2, 3, 1))
    xp = jnp.pad(x_nhwc, ((0, 0), (1, 1), (1, 1), (0, 0)))           # (B, H+2, W+2, Cin)
    xp_flat = xp.reshape(B, (H + 2) * Wp, Cin)
    xp_flat = jnp.pad(xp_flat, ((0, 0), (0, 2), (0, 0)))             # slack for last tap
    n_rows_in = xp_flat.shape[1]

    w_taps = jnp.transpose(w_enc, (2, 3, 1, 0)).reshape(9, Cin, Cout)  # (9, Cin, Cout)
    b_row = b_enc.reshape(1, Cout)

    kernel = functools.partial(_enc_kernel, H=H, W=W)
    feat = pl.pallas_call(
        kernel,
        out_shape=jax.ShapeDtypeStruct((B, H * Wp, Cout), jnp.float32),
        grid=(B,),
        in_specs=[pl.BlockSpec((1, n_rows_in, Cin), lambda b: (b, 0, 0)),
                  pl.BlockSpec((9, Cin, Cout), lambda b: (0, 0, 0)),
                  pl.BlockSpec((1, Cout), lambda b: (0, 0))],
        out_specs=pl.BlockSpec((1, H * Wp, Cout), lambda b: (b, 0, 0)),
        compiler_params=pltpu.CompilerParams(
            dimension_semantics=("parallel",),
            vmem_limit_bytes=32 * 1024 * 1024),
    )(xp_flat, w_taps, b_row)
    return feat                                                       # (B, H*Wp, Cout)


# ------------------------------ query kernel -------------------------------
_CORNERS = ((-1.0, -1.0), (-1.0, 1.0), (1.0, -1.0), (1.0, 1.0))       # (r, c) order


def _liif_query_kernel(qf_ref, ex_ref,
                       w1f_ref, w1x_ref, b1_ref, w2_ref, b2_ref, w3_ref, b3_ref,
                       out_ref):
    # qf_ref : (1, C, 4*TQ) bf16 gathered features; corner k lives on lanes [k*TQ,(k+1)*TQ)
    # ex_ref : (1, 4, 4*TQ) f32  rows: rel_h, rel_w, qc_h, qc_w (same corner-blocked layout)
    # weights pre-transposed in the wrapper so every matmul is (M,K)@(K,N) with N = 4*TQ
    # out_ref: (1, 3, TQ)   f32  lane-dense RGB for this query tile
    TQ = out_ref.shape[2]

    # ---- fused local-ensemble MLP: all 4 corners in one set of matmuls ----
    h = jnp.dot(w1f_ref[...], qf_ref[0], preferred_element_type=jnp.float32)
    h = h + jnp.dot(w1x_ref[...], ex_ref[0], preferred_element_type=jnp.float32)
    h = jnp.maximum(h + b1_ref[...], 0.0)                              # (Dh, 4*TQ)
    h = jnp.maximum(jnp.dot(w2_ref[...], h, preferred_element_type=jnp.float32)
                    + b2_ref[...], 0.0)                                # (Dh, 4*TQ)
    preds = jnp.dot(w3_ref[...], h, preferred_element_type=jnp.float32) + b3_ref[...]
    # preds: (3, 4*TQ), lane-major, corner-major blocks of TQ lanes

    # ---- local-ensemble weighting with diagonally swapped areas (f32 throughout) ----
    rel_h = ex_ref[0, 0:1, :]                                          # (1, 4*TQ)
    rel_w = ex_ref[0, 1:2, :]
    areas = [jnp.abs(rel_h[:, k * TQ:(k + 1) * TQ] * rel_w[:, k * TQ:(k + 1) * TQ]) + 1e-9
             for k in range(4)]
    inv_total = pl.reciprocal(areas[0] + areas[1] + areas[2] + areas[3], approx=True)
    ret = (preds[:, 0 * TQ:1 * TQ] * (areas[3] * inv_total)
           + preds[:, 1 * TQ:2 * TQ] * (areas[2] * inv_total)
           + preds[:, 2 * TQ:3 * TQ] * (areas[1] * inv_total)
           + preds[:, 3 * TQ:4 * TQ] * (areas[0] * inv_total))
    out_ref[0] = ret.astype(out_ref.dtype)                             # (3, TQ) lane-dense


def liif_query(feat, grid, cell, imnet_params, H, W, *, tq=1024):
    """feat: (B, H*(W+2), C) f32 from encoder_conv3x3; grid/cell: (B, Q, 2)."""
    B, Q, _ = grid.shape
    C = feat.shape[-1]
    Wp = W + 2

    # Channels-major bf16 feature map (tiny: C x H*Wp per image).  The gather below then
    # emits q_feat directly in kernel layout -> no extra HBM pass over the big q_feat stream.
    feat_cm = jnp.transpose(feat, (0, 2, 1)).astype(jnp.bfloat16)      # (B, C, H*Wp)

    Qp = pl.cdiv(Q, tq) * tq
    if Qp != Q:                                   # pad queries to a whole number of tiles
        pad = ((0, 0), (0, Qp - Q), (0, 0))
        grid = jnp.pad(grid, pad)
        cell = jnp.pad(cell, pad)
    nqt = Qp // tq

    # ---- per-corner nearest pixel index + relative coords, computed ONCE here (f32) ----
    eps = 1e-6
    fH, fW = float(H), float(W)
    gh, gw = grid[..., 0], grid[..., 1]                                # (B, Qp)
    qc_h = cell[..., 0] * fH
    qc_w = cell[..., 1] * fW
    idx_c, rel_h_c, rel_w_c = [], [], []
    for (r, c) in _CORNERS:
        fh = jnp.clip(gh + r / fH, -1.0 + eps, 1.0 - eps)
        fw = jnp.clip(gw + c / fW, -1.0 + eps, 1.0 - eps)
        # grid_sample(mode='nearest', align_corners=False) pixel index, then its center
        ih = jnp.clip(jnp.round(((fh + 1.0) * fH - 1.0) * 0.5), 0.0, fH - 1.0)
        iw = jnp.clip(jnp.round(((fw + 1.0) * fW - 1.0) * 0.5), 0.0, fW - 1.0)
        idx_c.append((ih * Wp + iw).astype(jnp.int32))
        sh = -1.0 + (2.0 * ih + 1.0) / fH
        sw = -1.0 + (2.0 * iw + 1.0) / fW
        rel_h_c.append((gh - sh) * fH)
        rel_w_c.append((gw - sw) * fW)
    idx = jnp.stack(idx_c, axis=1)                                     # (B, 4, Qp)
    ex = jnp.stack([jnp.stack(rel_h_c, axis=1),
                    jnp.stack(rel_w_c, axis=1),
                    jnp.stack([qc_h] * 4, axis=1),
                    jnp.stack([qc_w] * 4, axis=1)], axis=1)            # (B, 4comp, 4corner, Qp)

    # Corner-blocked, tile-major column ordering: m = tile*4*tq + corner*tq + j.
    idx_r = idx.reshape(B, 4, nqt, tq).transpose(0, 2, 1, 3).reshape(B, nqt * 4 * tq)
    ex_r = ex.reshape(B, 4, 4, nqt, tq).transpose(0, 1, 3, 2, 4).reshape(B, 4, nqt * 4 * tq)

    # XLA gather writes q_feat directly as (B, C, 4*Qp) bf16, queries on lanes, corners
    # pre-concatenated per tile (indices are data-independent of kernel internals).
    qf = jax.vmap(lambda f, i: jnp.take(f, i, axis=1))(feat_cm, idx_r)  # (B, C, 4*Qp)

    w1, b1, w2, b2, w3, b3 = imnet_params
    Dh = w1.shape[1]
    Do = w3.shape[1]
    w1f = w1[:C].T.astype(jnp.bfloat16)    # (Dh, C)  feature half of layer 1, bf16 (MXU)
    w1x = w1[C:].T                         # (Dh, 4)  rows: rel_h, rel_w, qc_h, qc_w (f32)
    b1c = b1.reshape(Dh, 1)
    w2t = w2.T                             # (Dh, Dh) f32
    b2c = b2.reshape(Dh, 1)
    w3t = w3.T                             # (Do, Dh) f32
    b3c = b3.reshape(Do, 1)

    # VMEM/step at tq=1024: qf 480KB + ex 64KB (x2 buffers) + ~3MB f32 activations
    # -> well under the 32MB scoped default on v5e/v6e/v7x.
    out_t = pl.pallas_call(
        _liif_query_kernel,
        out_shape=jax.ShapeDtypeStruct((B, Do, Qp), jnp.float32),
        grid=(nqt, B),                      # Q-tile axis first (v7x megacore when B == 1)
        in_specs=[
            pl.BlockSpec((1, C, 4 * tq), lambda q, b: (b, 0, q)),
            pl.BlockSpec((1, 4, 4 * tq), lambda q, b: (b, 0, q)),
            pl.BlockSpec((Dh, C), lambda q, b: (0, 0)),
            pl.BlockSpec((Dh, 4), lambda q, b: (0, 0)),
            pl.BlockSpec((Dh, 1), lambda q, b: (0, 0)),
            pl.BlockSpec((Dh, Dh), lambda q, b: (0, 0)),
            pl.BlockSpec((Dh, 1), lambda q, b: (0, 0)),
            pl.BlockSpec((Do, Dh), lambda q, b: (0, 0)),
            pl.BlockSpec((Do, 1), lambda q, b: (0, 0)),
        ],
        out_specs=pl.BlockSpec((1, Do, tq), lambda q, b: (b, 0, q)),
        compiler_params=pltpu.CompilerParams(
            dimension_semantics=("parallel", "parallel"),
            vmem_limit_bytes=32 * 1024 * 1024),
    )(qf, ex_r, w1f, w1x, b1c, w2t, b2c, w3t, b3c)

    return jnp.transpose(out_t, (0, 2, 1))[:, :Q, :]                    # (B, Q, 3)


def liif_forward(x, grid, cell, enc_params, imnet_params):
    w_enc, b_enc = enc_params
    _, _, H, W = x.shape
    feat = encoder_conv3x3(x, w_enc, b_enc)                     # gen_feat
    return liif_query(feat, grid, cell, imnet_params, H, W)     # query_rgb


# --------------------------- pure-JAX reference ----------------------------
def reference_forward(x, grid, cell, enc_params, imnet_params):
    w_enc, b_enc = enc_params
    w1, b1, w2, b2, w3, b3 = imnet_params
    B, Cin, H, W = x.shape
    Cout = w_enc.shape[0]
    xp = jnp.pad(x, ((0, 0), (0, 0), (1, 1), (1, 1)))
    patches = jnp.stack([xp[:, :, kh:kh + H, kw:kw + W]
                         for kh in range(3) for kw in range(3)], axis=2)
    patches = patches.reshape(B, Cin * 9, H * W).transpose(0, 2, 1)
    feat = patches @ w_enc.reshape(Cout, Cin * 9).T + b_enc[None, None, :]   # (B, HW, Cout)

    eps = 1e-6
    gh, gw = grid[..., 0:1], grid[..., 1:2]
    qc_h, qc_w = cell[..., 0:1] * H, cell[..., 1:2] * W

    def mlp(xin):
        h = jnp.maximum(xin @ w1 + b1, 0.0)
        h = jnp.maximum(h @ w2 + b2, 0.0)
        return h @ w3 + b3

    preds, areas = [], []
    for r in (-1.0, 1.0):
        for c in (-1.0, 1.0):
            fh = jnp.clip(gh + r / H, -1.0 + eps, 1.0 - eps)
            fw = jnp.clip(gw + c / W, -1.0 + eps, 1.0 - eps)
            ih = jnp.clip(jnp.round(((fh + 1.0) * H - 1.0) * 0.5), 0.0, H - 1.0)
            iw = jnp.clip(jnp.round(((fw + 1.0) * W - 1.0) * 0.5), 0.0, W - 1.0)
            flat = (ih * W + iw).astype(jnp.int32)[..., 0]                   # (B, Q)
            q_feat = jax.vmap(lambda f, i: jnp.take(f, i, axis=0))(feat, flat)
            sh = -1.0 + (2.0 * ih + 1.0) / H
            sw = -1.0 + (2.0 * iw + 1.0) / W
            rel_h, rel_w = (gh - sh) * H, (gw - sw) * W
            xin = jnp.concatenate([q_feat, rel_h, rel_w, qc_h, qc_w], axis=-1)
            preds.append(mlp(xin))
            areas.append(jnp.abs(rel_h * rel_w) + 1e-9)
    total = sum(areas)
    areas = [areas[3], areas[2], areas[1], areas[0]]
    ret = 0.0
    for p_, a_ in zip(preds, areas):
        ret = ret + p_ * (a_ / total)
    return ret


# --------------------------------- main -------------------------------------
if __name__ == "__main__":
    B, Cin, H, W = 2, 3, 16, 16
    Q = 500                          # not a multiple of the tile -> exercises Q padding
    Cfeat = 60                       # encoder.out_dim  -> imnet in_dim = Cfeat + 4 = 64
    Din, Dh, Do = Cfeat + 4, 64, 3

    key = jax.random.PRNGKey(0)
    ks = jax.random.split(key, 11)
    w_enc = 0.1 * jax.random.normal(ks[0], (Cfeat, Cin, 3, 3), jnp.float32)
    b_enc = 0.01 * jax.random.normal(ks[1], (Cfeat,), jnp.float32)
    w1 = jax.random.normal(ks[2], (Din, Dh), jnp.float32) / jnp.sqrt(Din)
    b1 = 0.01 * jax.random.normal(ks[3], (1, Dh), jnp.float32)
    w2 = jax.random.normal(ks[4], (Dh, Dh), jnp.float32) / jnp.sqrt(Dh)
    b2 = 0.01 * jax.random.normal(ks[5], (1, Dh), jnp.float32)
    w3 = jax.random.normal(ks[6], (Dh, Do), jnp.float32) / jnp.sqrt(Dh)
    b3 = 0.01 * jax.random.normal(ks[7], (1, Do), jnp.float32)

    x = jax.random.normal(ks[8], (B, Cin, H, W), jnp.float32)
    grid = jax.random.uniform(ks[9], (B, Q, 2), jnp.float32, minval=-1.0, maxval=1.0)
    cell = jnp.full((B, Q, 2), 2.0 / 32.0, jnp.float32)

    enc_params = (w_enc, b_enc)
    imnet_params = (w1, b1, w2, b2, w3, b3)

    out = liif_forward(x, grid, cell, enc_params, imnet_params)
    out = jax.block_until_ready(out)

    ref = reference_forward(x, grid, cell, enc_params, imnet_params)
    err = float(jnp.max(jnp.abs(out - ref)))
    # Tolerance vs. the pure-f32 reference: the q_feat stream + layer-1 feature weights are
    # intentionally bf16 (perf review) and the ensemble divide uses the EUP approx reciprocal;
    # expected max error is a few 1e-3 (the all-f32 variant was previously validated at 1e-3).
    if err > 2e-2:
        raise AssertionError(f"Pallas LIIF output mismatch, max abs err = {err}")

    print("KERNEL_OK")
</pallas_src>

<mosaic_0001>
module attributes {stable_mosaic.version = 11 : i64} {
  func.func @_enc_kernel(%arg0: i32, %arg1: memref<1x326x3xf32, #tpu.memory_space<vmem>>, %arg2: memref<9x3x60xf32, #tpu.memory_space<vmem>>, %arg3: memref<1x60xf32, #tpu.memory_space<vmem>>, %arg4: memref<1x288x60xf32, #tpu.memory_space<vmem>>) attributes {dimension_semantics = [#tpu.dimension_semantics<parallel>], iteration_bounds = array<i64: 2>, scalar_prefetch = 0 : i64, scratch_operands = 0 : i64, tpu.core_type = #tpu.core_type<tc>, window_params = [{transform_indices = @transform_0, window_bounds = array<i64: 1, 326, 3>}, {pipeline_mode = #tpu.pipeline_mode<synchronous>, transform_indices = @transform_1, window_bounds = array<i64: 9, 3, 60>}, {pipeline_mode = #tpu.pipeline_mode<synchronous>, transform_indices = @transform_2, window_bounds = array<i64: 1, 60>}, {transform_indices = @transform_3, window_bounds = array<i64: 1, 288, 60>}]} {
    %cst = arith.constant 0.000000e+00 : f32
    %0 = vector.broadcast %cst : f32 to vector<288x60xf32>
    %c0 = arith.constant 0 : index
    %c0_0 = arith.constant 0 : index
    %c0_1 = arith.constant 0 : index
    %1 = vector.load %arg1[%c0, %c0_0, %c0_1] : memref<1x326x3xf32, #tpu.memory_space<vmem>>, vector<1x288x3xf32>
    %2 = vector.shape_cast %1 : vector<1x288x3xf32> to vector<288x3xf32>
    %c0_2 = arith.constant 0 : index
    %c0_3 = arith.constant 0 : index
    %c0_4 = arith.constant 0 : index
    %3 = vector.load %arg2[%c0_2, %c0_3, %c0_4] : memref<9x3x60xf32, #tpu.memory_space<vmem>>, vector<1x3x60xf32>
    %4 = vector.shape_cast %3 : vector<1x3x60xf32> to vector<3x60xf32>
    %cst_5 = arith.constant dense<0.000000e+00> : vector<288x60xf32>
    %5 = tpu.matmul %2, %4, %cst_5 {dimension_numbers = #tpu.dot_dimension_numbers<[1], [0], [0], [1], [0, 0, 1, 1], [], []>} : vector<288x3xf32>, vector<3x60xf32>, vector<288x60xf32> -> vector<288x60xf32>
    %6 = arith.addf %0, %5 : vector<288x60xf32>
    %c0_6 = arith.constant 0 : index
    %c1 = arith.constant 1 : index
    %c0_7 = arith.constant 0 : index
    %7 = vector.load %arg1[%c0_6, %c1, %c0_7] : memref<1x326x3xf32, #tpu.memory_space<vmem>>, vector<1x288x3xf32>
    %8 = vector.shape_cast %7 : vector<1x288x3xf32> to vector<288x3xf32>
    %c1_8 = arith.constant 1 : index
    %c0_9 = arith.constant 0 : index
    %c0_10 = arith.constant 0 : index
    %9 = vector.load %arg2[%c1_8, %c0_9, %c0_10] : memref<9x3x60xf32, #tpu.memory_space<vmem>>, vector<1x3x60xf32>
    %10 = vector.shape_cast %9 : vector<1x3x60xf32> to vector<3x60xf32>
    %cst_11 = arith.constant dense<0.000000e+00> : vector<288x60xf32>
    %11 = tpu.matmul %8, %10, %cst_11 {dimension_numbers = #tpu.dot_dimension_numbers<[1], [0], [0], [1], [0, 0, 1, 1], [], []>} : vector<288x3xf32>, vector<3x60xf32>, vector<288x60xf32> -> vector<288x60xf32>
    %12 = arith.addf %6, %11 : vector<288x60xf32>
    %c0_12 = arith.constant 0 : index
    %c2 = arith.constant 2 : index
    %c0_13 = arith.constant 0 : index
    %13 = vector.load %arg1[%c0_12, %c2, %c0_13] : memref<1x326x3xf32, #tpu.memory_space<vmem>>, vector<1x288x3xf32>
    %14 = vector.shape_cast %13 : vector<1x288x3xf32> to vector<288x3xf32>
    %c2_14 = arith.constant 2 : index
    %c0_15 = arith.constant 0 : index
    %c0_16 = arith.constant 0 : index
    %15 = vector.load %arg2[%c2_14, %c0_15, %c0_16] : memref<9x3x60xf32, #tpu.memory_space<vmem>>, vector<1x3x60xf32>
    %16 = vector.shape_cast %15 : vector<1x3x60xf32> to vector<3x60xf32>
    %cst_17 = arith.constant dense<0.000000e+00> : vector<288x60xf32>
    %17 = tpu.matmul %14, %16, %cst_17 {dimension_numbers = #tpu.dot_dimension_numbers<[1], [0], [0], [1], [0, 0, 1, 1], [], []>} : vector<288x3xf32>, vector<3x60xf32>, vector<288x60xf32> -> vector<288x60xf32>
    %18 = arith.addf %12, %17 : vector<288x60xf32>
    %c0_18 = arith.constant 0 : index
    %c18 = arith.constant 18 : index
    %c0_19 = arith.constant 0 : index
    %19 = vector.load %arg1[%c0_18, %c18, %c0_19] : memref<1x326x3xf32, #tpu.memory_space<vmem>>, vector<1x288x3xf32>
    %20 = vector.shape_cast %19 : vector<1x288x3xf32> to vector<288x3xf32>
    %c3 = arith.constant 3 : index
    %c0_20 = arith.constant 0 : index
    %c0_21 = arith.constant 0 : index
    %21 = vector.load %arg2[%c3, %c0_20, %c0_21] : memref<9x3x60xf32, #tpu.memory_space<vmem>>, vector<1x3x60xf32>
    %22 = vector.shape_cast %21 : vector<1x3x60xf32> to vector<3x60xf32>
    %cst_22 = arith.constant dense<0.000000e+00> : vector<288x60xf32>
    %23 = tpu.matmul %20, %22, %cst_22 {dimension_numbers = #tpu.dot_dimension_numbers<[1], [0], [0], [1], [0, 0, 1, 1], [], []>} : vector<288x3xf32>, vector<3x60xf32>, vector<288x60xf32> -> vector<288x60xf32>
    %24 = arith.addf %18, %23 : vector<288x60xf32>
    %c0_23 = arith.constant 0 : index
    %c19 = arith.constant 19 : index
    %c0_24 = arith.constant 0 : index
    %25 = vector.load %arg1[%c0_23, %c19, %c0_24] : memref<1x326x3xf32, #tpu.memory_space<vmem>>, vector<1x288x3xf32>
    %26 = vector.shape_cast %25 : vector<1x288x3xf32> to vector<288x3xf32>
    %c4 = arith.constant 4 : index
    %c0_25 = arith.constant 0 : index
    %c0_26 = arith.constant 0 : index
    %27 = vector.load %arg2[%c4, %c0_25, %c0_26] : memref<9x3x60xf32, #tpu.memory_space<vmem>>, vector<1x3x60xf32>
    %28 = vector.shape_cast %27 : vector<1x3x60xf32> to vector<3x60xf32>
    %cst_27 = arith.constant dense<0.000000e+00> : vector<288x60xf32>
    %29 = tpu.matmul %26, %28, %cst_27 {dimension_numbers = #tpu.dot_dimension_numbers<[1], [0], [0], [1], [0, 0, 1, 1], [], []>} : vector<288x3xf32>, vector<3x60xf32>, vector<288x60xf32> -> vector<288x60xf32>
    %30 = arith.addf %24, %29 : vector<288x60xf32>
    %c0_28 = arith.constant 0 : index
    %c20 = arith.constant 20 : index
    %c0_29 = arith.constant 0 : index
    %31 = vector.load %arg1[%c0_28, %c20, %c0_29] : memref<1x326x3xf32, #tpu.memory_space<vmem>>, vector<1x288x3xf32>
    %32 = vector.shape_cast %31 : vector<1x288x3xf32> to vector<288x3xf32>
    %c5 = arith.constant 5 : index
    %c0_30 = arith.constant 0 : index
    %c0_31 = arith.constant 0 : index
    %33 = vector.load %arg2[%c5, %c0_30, %c0_31] : memref<9x3x60xf32, #tpu.memory_space<vmem>>, vector<1x3x60xf32>
    %34 = vector.shape_cast %33 : vector<1x3x60xf32> to vector<3x60xf32>
    %cst_32 = arith.constant dense<0.000000e+00> : vector<288x60xf32>
    %35 = tpu.matmul %32, %34, %cst_32 {dimension_numbers = #tpu.dot_dimension_numbers<[1], [0], [0], [1], [0, 0, 1, 1], [], []>} : vector<288x3xf32>, vector<3x60xf32>, vector<288x60xf32> -> vector<288x60xf32>
    %36 = arith.addf %30, %35 : vector<288x60xf32>
    %c0_33 = arith.constant 0 : index
    %c36 = arith.constant 36 : index
    %c0_34 = arith.constant 0 : index
    %37 = vector.load %arg1[%c0_33, %c36, %c0_34] : memref<1x326x3xf32, #tpu.memory_space<vmem>>, vector<1x288x3xf32>
    %38 = vector.shape_cast %37 : vector<1x288x3xf32> to vector<288x3xf32>
    %c6 = arith.constant 6 : index
    %c0_35 = arith.constant 0 : index
    %c0_36 = arith.constant 0 : index
    %39 = vector.load %arg2[%c6, %c0_35, %c0_36] : memref<9x3x60xf32, #tpu.memory_space<vmem>>, vector<1x3x60xf32>
    %40 = vector.shape_cast %39 : vector<1x3x60xf32> to vector<3x60xf32>
    %cst_37 = arith.constant dense<0.000000e+00> : vector<288x60xf32>
    %41 = tpu.matmul %38, %40, %cst_37 {dimension_numbers = #tpu.dot_dimension_numbers<[1], [0], [0], [1], [0, 0, 1, 1], [], []>} : vector<288x3xf32>, vector<3x60xf32>, vector<288x60xf32> -> vector<288x60xf32>
    %42 = arith.addf %36, %41 : vector<288x60xf32>
    %c0_38 = arith.constant 0 : index
    %c37 = arith.constant 37 : index
    %c0_39 = arith.constant 0 : index
    %43 = vector.load %arg1[%c0_38, %c37, %c0_39] : memref<1x326x3xf32, #tpu.memory_space<vmem>>, vector<1x288x3xf32>
    %44 = vector.shape_cast %43 : vector<1x288x3xf32> to vector<288x3xf32>
    %c7 = arith.constant 7 : index
    %c0_40 = arith.constant 0 : index
    %c0_41 = arith.constant 0 : index
    %45 = vector.load %arg2[%c7, %c0_40, %c0_41] : memref<9x3x60xf32, #tpu.memory_space<vmem>>, vector<1x3x60xf32>
    %46 = vector.shape_cast %45 : vector<1x3x60xf32> to vector<3x60xf32>
    %cst_42 = arith.constant dense<0.000000e+00> : vector<288x60xf32>
    %47 = tpu.matmul %44, %46, %cst_42 {dimension_numbers = #tpu.dot_dimension_numbers<[1], [0], [0], [1], [0, 0, 1, 1], [], []>} : vector<288x3xf32>, vector<3x60xf32>, vector<288x60xf32> -> vector<288x60xf32>
    %48 = arith.addf %42, %47 : vector<288x60xf32>
    %c0_43 = arith.constant 0 : index
    %c38 = arith.constant 38 : index
    %c0_44 = arith.constant 0 : index
    %49 = vector.load %arg1[%c0_43, %c38, %c0_44] : memref<1x326x3xf32, #tpu.memory_space<vmem>>, vector<1x288x3xf32>
    %50 = vector.shape_cast %49 : vector<1x288x3xf32> to vector<288x3xf32>
    %c8 = arith.constant 8 : index
    %c0_45 = arith.constant 0 : index
    %c0_46 = arith.constant 0 : index
    %51 = vector.load %arg2[%c8, %c0_45, %c0_46] : memref<9x3x60xf32, #tpu.memory_space<vmem>>, vector<1x3x60xf32>
    %52 = vector.shape_cast %51 : vector<1x3x60xf32> to vector<3x60xf32>
    %cst_47 = arith.constant dense<0.000000e+00> : vector<288x60xf32>
    %53 = tpu.matmul %50, %52, %cst_47 {dimension_numbers = #tpu.dot_dimension_numbers<[1], [0], [0], [1], [0, 0, 1, 1], [], []>} : vector<288x3xf32>, vector<3x60xf32>, vector<288x60xf32> -> vector<288x60xf32>
    %54 = arith.addf %48, %53 : vector<288x60xf32>
    %c0_48 = arith.constant 0 : index
    %c0_49 = arith.constant 0 : index
    %55 = vector.load %arg3[%c0_48, %c0_49] : memref<1x60xf32, #tpu.memory_space<vmem>>, vector<1x60xf32>
    %56 = vector.broadcast %55 : vector<1x60xf32> to vector<288x60xf32>
    %57 = arith.addf %54, %56 : vector<288x60xf32>
    %c0_50 = arith.constant 0 : index
    %c0_51 = arith.constant 0 : index
    %c0_52 = arith.constant 0 : index
    %58 = vector.load %arg4[%c0_50, %c0_51, %c0_52] : memref<1x288x60xf32, #tpu.memory_space<vmem>>, vector<1x288x60xf32>
    %59 = vector.shape_cast %58 : vector<1x288x60xf32> to vector<288x60xf32>
    %60 = vector.shape_cast %57 : vector<288x60xf32> to vector<1x288x60xf32>
    tpu.vector_store %arg4[%c0_50, %c0_51, %c0_52], %60 {strides = array<i32>} : memref<1x288x60xf32, #tpu.memory_space<vmem>>, vector<1x288x60xf32>,
    return
  }
  func.func @transform_0(%arg0: i32) -> (i32, i32, i32) {
    %c0_i32 = arith.constant 0 : i32
    %c0_i32_0 = arith.constant 0 : i32
    %c0_i32_1 = arith.constant 0 : i32
    return %arg0, %c0_i32, %c0_i32_0 : i32, i32, i32
  }
  func.func @transform_1(%arg0: i32) -> (i32, i32, i32) {
    %c0_i32 = arith.constant 0 : i32
    %c0_i32_0 = arith.constant 0 : i32
    %c0_i32_1 = arith.constant 0 : i32
    %c0_i32_2 = arith.constant 0 : i32
    return %c0_i32, %c0_i32_0, %c0_i32_1 : i32, i32, i32
  }
  func.func @transform_2(%arg0: i32) -> (i32, i32) {
    %c0_i32 = arith.constant 0 : i32
    %c0_i32_0 = arith.constant 0 : i32
    %c0_i32_1 = arith.constant 0 : i32
    return %c0_i32, %c0_i32_0 : i32, i32
  }
  func.func @transform_3(%arg0: i32) -> (i32, i32, i32) {
    %c0_i32 = arith.constant 0 : i32
    %c0_i32_0 = arith.constant 0 : i32
    %c0_i32_1 = arith.constant 0 : i32
    return %arg0, %c0_i32, %c0_i32_0 : i32, i32, i32
  }
}

</mosaic_0001>

<bundles_post_ra>
// kernel: tpu_custom_call.1
= control target key start
LH: loop header
LB: loop body
LE: loop exit
PB: predicated region body
PF: predicated region fallthrough
CT: control target
= control target key end

     0   :  { %s3414_s12 = smov 0   ;;  %s4387_s0 = inlined_call_operand.vmem [shape: f32[2,326,3], index: 0, kind: input, shape index: {}]   ;;  %s4388_s1 = inlined_call_operand.vmem [shape: f32[9,3,60], index: 1, kind: input, shape index: {}]   ;;  %s4389_s2 = inlined_call_operand.vmem [shape: f32[1,60], index: 2, kind: input, shape index: {}]   ;;  %s4390_s3 = inlined_call_operand.vmem [shape: f32[2,288,60], index: 3, kind: output, shape index: {}]  }
   0x1 LB: > { %s3022_s13 = sadd.s32 4294967295, %s3392_s12   ;;  %p3026_p0 = scmp.ge.s32.totalorder %s3392_s12, 1  ;;  %s3392_s12 = sphi %s3414_s12, %s13_s12  }
   0x2   : > { %p137_p1 = scmp.lt.s32.totalorder %s3392_s12, 3 }
   0x4   : > { %p138_p2 = pnand %p3026_p0, %p137_p1 }
   0x5   : > { %p161_p3 = scmp.lt.s32.totalorder (!%p138_p2), %s3022_s13, 1 }
   0x6   : > { %141 = sbr.rel (%p138_p2) target bundleno = 798 (0x31e), region = 32 }
   0xb   : > { %v3029_v0 = vld [vmem:[%s4388_s1 + $0x4] sm:$0x7]  ;;  %vm355_vm0 = vcmask 1042432   ;;  %v3104_v1 = vld [vmem:[%s4388_s1 + $0x8] sm:$0x7]  ;;  %s4392_s13 = smov (!%p161_p3, %s3022_s13), 1 }
   0xc   : > { %3372 = vmatpush.msk.msra.mxu1 %vm355_vm0, %v3029_v0  ;;  %3373 = vmatpush.msk.msra.mxu2 %vm355_vm0, %v3029_v0  ;;  %v3142_v2 = vld [vmem:[%s4388_s1 + $0xc] sm:$0x7]  ;;  %v207_v3 = vld [vmem:[%s4388_s1] sm:$0x7]  ;;  %v3180_v4 = vld [vmem:[%s4388_s1 + $0x10] sm:$0x7] }
   0xd   : > { %3374 = vmatpush.msk.msra.mxu3 %vm355_vm0, %v3029_v0  ;;  %s3375_s24 = smul.u32 328, %s4392_s13  ;;  %3030 = vmatpush.msk.msra.mxu0 %vm355_vm0, %v3029_v0  ;;  %vm246_vm1 = vcmask 23552   ;;  %v3256_v29 = vld [vmem:[%s4388_s1 + $0x18] sm:$0x7]  ;;  %v3294_v30 = vld [vmem:[%s4388_s1 + $0x1c] sm:$0x7] }
   0xe   : > { %3105 = vmatpush.msk.msrb.mxu2 %vm355_vm0, %v3104_v1  ;;  %3067 = vmatpush.msk.msrb.mxu1 %vm355_vm0, %v207_v3  ;;  %v3218_v31 = vld [vmem:[%s4388_s1 + $0x14] sm:$0x7]  ;;  %v3332_v36 = vld [vmem:[%s4388_s1 + $0x20] sm:$0x7]  ;;  %s3376_s9 = smul.u32 288, %s4392_s13  ;;  %vm2930_vm2 = vcmask 490496  }
   0xf   : > { %3143 = vmatpush.msk.msrb.mxu3 %vm355_vm0, %v3142_v2  ;;  %3181 = vmatpush.msk.msrb.mxu0 %vm355_vm0, %v3180_v4  ;;  %s3451_s27 = scalar_lea.vmem %s4387_s0, %s3375_s24 }
  0x10   : > { %v217_v5 = vld [vmem:[%s3451_s27 + $0x49] sm:$0xff]  ;;  %v226_v6 = vld [vmem:[%s3451_s27 + $0x91] sm:$0xff]  ;;  %v235_v7 = vld [vmem:[%s3451_s27 + $0xd9] sm:$0xff]  ;;  %s4111_s13 = scalar_lea.vmem %s4390_s3, %s3376_s9 }
  0x11   : > { %3040 = vmatmul.msk.f32.vlgmr.msra.gmra.mxu1 %vm246_vm1, %v217_v5  ;;  %3049 = vmatmul.msk.f32.vlgmr.msra.gmra.mxu2 %vm246_vm1, %v226_v6  ;;  %v208_v8 = vld [vmem:[%s3451_s27 + $0x1] sm:$0xff]  ;;  %v218_v9 = vld [vmem:[%s3451_s27 + $0x51] sm:$0xff]  ;;  %v227_v10 = vld [vmem:[%s3451_s27 + $0x99] sm:$0xff] }
  0x12   : > { %3058 = vmatmul.msk.f32.vlgmr.msra.gmra.mxu3 %vm246_vm1, %v235_v7  ;;  %3031 = vmatmul.msk.f32.vlgmr.msra.gmra.mxu0 %vm246_vm1, %v208_v8  ;;  %v236_v11 = vld [vmem:[%s3451_s27 + $0xe1] sm:$0xff]  ;;  %v209_v12 = vld [vmem:[%s3451_s27 + $0x9] sm:$0xff]  ;;  %v219_v13 = vld [vmem:[%s3451_s27 + $0x59] sm:$0xff] }
  0x13   : > { %v228_v14 = vld [vmem:[%s3451_s27 + $0xa1] sm:$0xff]  ;;  %v237_v15 = vld [vmem:[%s3451_s27 + $0xe9] sm:$0xff]  ;;  %v210_v16 = vld [vmem:[%s3451_s27 + $0x11] sm:$0xff]  ;;  %3257 = vmatpush.msk.msra.mxu2 %vm355_vm0, %v3256_v29  ;;  %3295 = vmatpush.msk.msra.mxu3 %vm355_vm0, %v3294_v30 }
  0x14   : > { %v220_v17 = vld [vmem:[%s3451_s27 + $0x61] sm:$0xff]  ;;  %v229_v18 = vld [vmem:[%s3451_s27 + $0xa9] sm:$0xff]  ;;  %v238_v19 = vld [vmem:[%s3451_s27 + $0xf1] sm:$0xff]  ;;  %3219 = vmatpush.msk.msra.mxu1 %vm355_vm0, %v3218_v31  ;;  %3333 = vmatpush.msk.msra.mxu0 %vm355_vm0, %v3332_v36 }
  0x15   : > { %v211_v20 = vld [vmem:[%s3451_s27 + $0x19] sm:$0xff]  ;;  %v221_v21 = vld [vmem:[%s3451_s27 + $0x69] sm:$0xff]  ;;  %v230_v22 = vld [vmem:[%s3451_s27 + $0xb1] sm:$0xff] }
  0x16   : > { %v239_v23 = vld [vmem:[%s3451_s27 + $0xf9] sm:$0xff]  ;;  %v212_v24 = vld [vmem:[%s3451_s27 + $0x21] sm:$0xff]  ;;  %v222_v25 = vld [vmem:[%s3451_s27 + $0x71] sm:$0xff] }
  0x17   : > { %v231_v26 = vld [vmem:[%s3451_s27 + $0xb9] sm:$0xff]  ;;  %v240_v27 = vld [vmem:[%s3451_s27 + $0x101] sm:$0xff]  ;;  %v213_v28 = vld [vmem:[%s3451_s27 + $0x29] sm:$0xff] }
  0x18   : > { %v223_v32 = vld [vmem:[%s3451_s27 + $0x79] sm:$0xff]  ;;  %v232_v33 = vld [vmem:[%s3451_s27 + $0xc1] sm:$0xff]  ;;  %v241_v34 = vld [vmem:[%s3451_s27 + $0x109] sm:$0xff] }
  0x19   : > { %3041 = vmatmul.msk.f32.gmra.mxu1 %vm246_vm1, %v218_v9  ;;  %3050 = vmatmul.msk.f32.gmra.mxu2 %vm246_vm1, %v227_v10  ;;  %v214_v35 = vld [vmem:[%s3451_s27 + $0x31] sm:$0xff]  ;;  %v224_v37 = vld [vmem:[%s3451_s27 + $0x81] sm:$0xff]  ;;  %v233_v38 = vld [vmem:[%s3451_s27 + $0xc9] sm:$0xff] }
  0x1a   : > { %3059 = vmatmul.msk.f32.gmra.mxu3 %vm246_vm1, %v236_v11  ;;  %3032 = vmatmul.msk.f32.gmra.mxu0 %vm246_vm1, %v209_v12  ;;  %v242_v39 = vld [vmem:[%s3451_s27 + $0x111] sm:$0xff]  ;;  %v215_v40 = vld [vmem:[%s3451_s27 + $0x39] sm:$0xff]  ;;  %v225_v41 = vld [vmem:[%s3451_s27 + $0x89] sm:$0xff] }
  0x1b   : > { %v234_v42 = vld [vmem:[%s3451_s27 + $0xd1] sm:$0xff]  ;;  %v243_v43 = vld [vmem:[%s3451_s27 + $0x119] sm:$0xff]  ;;  %v216_v44 = vld [vmem:[%s3451_s27 + $0x41] sm:$0xff] }
  0x1c   : > { %v171_v45 = vld [vmem:[%s3451_s27] sm:$0xff]  ;;  %v1030_v47 = vld [vmem:[%s3451_s27 + $0x12] sm:$0xff]  ;;  %v172_v49 = vld [vmem:[%s3451_s27 + $0x8] sm:$0xff] }
  0x1d   : > { %v720_v46 = vld [vmem:[%s3451_s27 + $0x2] sm:$0xff]  ;;  %v1340_v48 = vld [vmem:[%s3451_s27 + $0x13] sm:$0xff]  ;;  %v721_v50 = vld [vmem:[%s3451_s27 + $0xa] sm:$0xff] }
  0x1e   : > { %v1031_v51 = vld [vmem:[%s3451_s27 + $0x1a] sm:$0xff]  ;;  %v173_v53 = vld [vmem:[%s3451_s27 + $0x10] sm:$0xff]  ;;  %v1032_v54 = vld [vmem:[%s3451_s27 + $0x22] sm:$0xff] }
  0x1f   : > { %v1341_v52 = vld [vmem:[%s3451_s27 + $0x1b] sm:$0xff]  ;;  %v1342_v55 = vld [vmem:[%s3451_s27 + $0x23] sm:$0xff]  ;;  %v1343_v58 = vld [vmem:[%s3451_s27 + $0x2b] sm:$0xff] }
  0x20   : > { %v174_v56 = vld [vmem:[%s3451_s27 + $0x18] sm:$0xff]  ;;  %v1033_v57 = vld [vmem:[%s3451_s27 + $0x2a] sm:$0xff]  ;;  %v175_v59 = vld [vmem:[%s3451_s27 + $0x20] sm:$0xff] }
  0x21   : > { %3042 = vmatmul.msk.f32.gmra.mxu1 %vm246_vm1, %v219_v13  ;;  %3051 = vmatmul.msk.f32.gmra.mxu2 %vm246_vm1, %v228_v14  ;;  %v1034_v60 = vld [vmem:[%s3451_s27 + $0x32] sm:$0xff]  ;;  %v176_v62 = vld [vmem:[%s3451_s27 + $0x28] sm:$0xff]  ;;  %v1035_v63 = vld [vmem:[%s3451_s27 + $0x3a] sm:$0xff] }
  0x22   : > { %3060 = vmatmul.msk.f32.gmra.mxu3 %vm246_vm1, %v237_v15  ;;  %3033 = vmatmul.msk.f32.gmra.mxu0 %vm246_vm1, %v210_v16  ;;  %v1344_v61 = vld [vmem:[%s3451_s27 + $0x33] sm:$0xff]  ;;  %v1345_v0 = vld [vmem:[%s3451_s27 + $0x3b] sm:$0xff]  ;;  %v1346_v3 = vld [vmem:[%s3451_s27 + $0x43] sm:$0xff] }
  0x23   : > { %v177_v1 = vld [vmem:[%s3451_s27 + $0x30] sm:$0xff]  ;;  %v1036_v2 = vld [vmem:[%s3451_s27 + $0x42] sm:$0xff]  ;;  %v178_v5 = vld [vmem:[%s3451_s27 + $0x38] sm:$0xff] }
  0x24   : > { %v1037_v6 = vld [vmem:[%s3451_s27 + $0x4a] sm:$0xff]  ;;  %v179_v12 = vld [vmem:[%s3451_s27 + $0x40] sm:$0xff]  ;;  %v1038_v13 = vld [vmem:[%s3451_s27 + $0x52] sm:$0xff] }
  0x25   : > { %v1347_v8 = vld [vmem:[%s3451_s27 + $0x4b] sm:$0xff]  ;;  %v1348_v15 = vld [vmem:[%s3451_s27 + $0x53] sm:$0xff]  ;;  %v1350_v29 = vld [vmem:[%s3451_s27 + $0x63] sm:$0xff] }
  0x26   : > { %v1351_v36 = vld [vmem:[%s3451_s27 + $0x6b] sm:$0xff] }
  0x29   : > { %3043 = vmatmul.msk.f32.gmra.mxu1 %vm246_vm1, %v220_v17  ;;  %3052 = vmatmul.msk.f32.gmra.mxu2 %vm246_vm1, %v229_v18 }
  0x2a   : > { %3061 = vmatmul.msk.f32.gmra.mxu3 %vm246_vm1, %v238_v19  ;;  %3034 = vmatmul.msk.f32.gmra.mxu0 %vm246_vm1, %v211_v20  ;;  %v180_v19 = vld [vmem:[%s3451_s27 + $0x48] sm:$0xff]  ;;  %v1039_v20 = vld [vmem:[%s3451_s27 + $0x5a] sm:$0xff] }
  0x31   : > { %3044 = vmatmul.msk.f32.gmra.mxu1 %vm246_vm1, %v221_v21  ;;  %3053 = vmatmul.msk.f32.gmra.mxu2 %vm246_vm1, %v230_v22  ;;  %v1349_v22 = vld [vmem:[%s3451_s27 + $0x5b] sm:$0xff] }
  0x32   : > { %3062 = vmatmul.msk.f32.gmra.mxu3 %vm246_vm1, %v239_v23  ;;  %3035 = vmatmul.msk.f32.gmra.mxu0 %vm246_vm1, %v212_v24 }
  0x39   : > { %3045 = vmatmul.msk.f32.gmra.mxu1 %vm246_vm1, %v222_v25  ;;  %3054 = vmatmul.msk.f32.gmra.mxu2 %vm246_vm1, %v231_v26  ;;  %v181_v26 = vld [vmem:[%s3451_s27 + $0x50] sm:$0xff] }
  0x3a   : > { %3063 = vmatmul.msk.f32.gmra.mxu3 %vm246_vm1, %v240_v27  ;;  %3036 = vmatmul.msk.f32.gmra.mxu0 %vm246_vm1, %v213_v28  ;;  %v1040_v27 = vld [vmem:[%s3451_s27 + $0x62] sm:$0xff] }
  0x41   : > { %3046 = vmatmul.msk.f32.gmra.mxu1 %vm246_vm1, %v223_v32  ;;  %3055 = vmatmul.msk.f32.gmra.mxu2 %vm246_vm1, %v232_v33  ;;  %v182_v33 = vld [vmem:[%s3451_s27 + $0x58] sm:$0xff] }
  0x42   : > { %3064 = vmatmul.msk.f32.gmra.mxu3 %vm246_vm1, %v241_v34  ;;  %3037 = vmatmul.msk.f32.gmra.mxu0 %vm246_vm1, %v214_v35  ;;  %v1041_v34 = vld [vmem:[%s3451_s27 + $0x6a] sm:$0xff] }
  0x49   : > { %3047 = vmatmul.msk.f32.gmra.mxu1 %vm246_vm1, %v224_v37  ;;  %3056 = vmatmul.msk.f32.gmra.mxu2 %vm246_vm1, %v233_v38 }
  0x4a   : > { %3065 = vmatmul.msk.f32.gmra.mxu3 %vm246_vm1, %v242_v39  ;;  %3038 = vmatmul.msk.f32.gmra.mxu0 %vm246_vm1, %v215_v40  ;;  %v183_v40 = vld [vmem:[%s3451_s27 + $0x60] sm:$0xff] }
  0x51   : > { %3048 = vmatmul.msk.f32.gmra.mxu1 %vm246_vm1, %v225_v41  ;;  %3057 = vmatmul.msk.f32.gmra.mxu2 %vm246_vm1, %v234_v42  ;;  %v1042_v41 = vld [vmem:[%s3451_s27 + $0x72] sm:$0xff] }
  0x52   : > { %3066 = vmatmul.msk.f32.gmra.mxu3 %vm246_vm1, %v243_v43  ;;  %3039 = vmatmul.msk.f32.gmra.mxu0 %vm246_vm1, %v216_v44  ;;  %v1352_v43 = vld [vmem:[%s3451_s27 + $0x73] sm:$0xff] }
  0x59   : > { %3068 = vmatmul.msk.f32.vlgmr.msrb.gmra.mxu1 %vm246_vm1, %v171_v45  ;;  %3106 = vmatmul.msk.f32.vlgmr.msrb.gmra.mxu2 %vm246_vm1, %v720_v46 }
  0x5a   : > { %3144 = vmatmul.msk.f32.vlgmr.msrb.gmra.mxu3 %vm246_vm1, %v1030_v47  ;;  %3182 = vmatmul.msk.f32.vlgmr.msrb.gmra.mxu0 %vm246_vm1, %v1340_v48  ;;  %v1043_v48 = vld [vmem:[%s3451_s27 + $0x7a] sm:$0xff] }
  0x61   : > { %3069 = vmatmul.msk.f32.gmra.mxu1 %vm246_vm1, %v172_v49  ;;  %3107 = vmatmul.msk.f32.gmra.mxu2 %vm246_vm1, %v721_v50  ;;  %v1353_v50 = vld [vmem:[%s3451_s27 + $0x7b] sm:$0xff] }
  0x62   : > { %3145 = vmatmul.msk.f32.gmra.mxu3 %vm246_vm1, %v1031_v51  ;;  %3183 = vmatmul.msk.f32.gmra.mxu0 %vm246_vm1, %v1341_v52 }
  0x69   : > { %3070 = vmatmul.msk.f32.gmra.mxu1 %vm246_vm1, %v173_v53  ;;  %3108 = vmatmul.msk.f32.gmra.mxu2 %vm246_vm1, %v1030_v47  ;;  %v184_v47 = vld [vmem:[%s3451_s27 + $0x68] sm:$0xff] }
  0x6a   : > { %3146 = vmatmul.msk.f32.gmra.mxu3 %vm246_vm1, %v1032_v54  ;;  %3184 = vmatmul.msk.f32.gmra.mxu0 %vm246_vm1, %v1342_v55  ;;  %v1044_v55 = vld [vmem:[%s3451_s27 + $0x82] sm:$0xff] }
  0x71   : > { %3071 = vmatmul.msk.f32.gmra.mxu1 %vm246_vm1, %v174_v56  ;;  %3109 = vmatmul.msk.f32.gmra.mxu2 %vm246_vm1, %v1031_v51 }
  0x72   : > { %3147 = vmatmul.msk.f32.gmra.mxu3 %vm246_vm1, %v1033_v57  ;;  %3185 = vmatmul.msk.f32.gmra.mxu0 %vm246_vm1, %v1343_v58 }
  0x79   : > { %3072 = vmatmul.msk.f32.gmra.mxu1 %vm246_vm1, %v175_v59  ;;  %3110 = vmatmul.msk.f32.gmra.mxu2 %vm246_vm1, %v1032_v54  ;;  %v185_v54 = vld [vmem:[%s3451_s27 + $0x70] sm:$0xff] }
  0x7a   : > { %3148 = vmatmul.msk.f32.gmra.mxu3 %vm246_vm1, %v1034_v60  ;;  %3186 = vmatmul.msk.f32.gmra.mxu0 %vm246_vm1, %v1344_v61  ;;  %v186_v61 = vld [vmem:[%s3451_s27 + $0x78] sm:$0xff] }
  0x81   : > { %3073 = vmatmul.msk.f32.gmra.mxu1 %vm246_vm1, %v176_v62  ;;  %3111 = vmatmul.msk.f32.gmra.mxu2 %vm246_vm1, %v1033_v57  ;;  %v1354_v57 = vld [vmem:[%s3451_s27 + $0x83] sm:$0xff] }
  0x82   : > { %3149 = vmatmul.msk.f32.gmra.mxu3 %vm246_vm1, %v1035_v63  ;;  %3187 = vmatmul.msk.f32.gmra.mxu0 %vm246_vm1, %v1345_v0  ;;  %v1045_v62 = vld [vmem:[%s3451_s27 + $0x8a] sm:$0xff] }
  0x83   : > { %v1355_v0 = vld [vmem:[%s3451_s27 + $0x8b] sm:$0xff] }
  0x89   : > { %3074 = vmatmul.msk.f32.gmra.mxu1 %vm246_vm1, %v177_v1  ;;  %3112 = vmatmul.msk.f32.gmra.mxu2 %vm246_vm1, %v1034_v60 }
  0x8a   : > { %3150 = vmatmul.msk.f32.gmra.mxu3 %vm246_vm1, %v1036_v2  ;;  %3188 = vmatmul.msk.f32.gmra.mxu0 %vm246_vm1, %v1346_v3 }
  0x8e   : > { %v3592_v4 = vpop.f32.mrf.mxu1 }
  0x8f   : > { %v3596_v7 = vpop.f32.mrf.mxu0 }
  0x91   : > { %3075 = vmatmul.msk.f32.gmra.mxu1 %vm246_vm1, %v178_v5  ;;  %3113 = vmatmul.msk.f32.gmra.mxu2 %vm246_vm1, %v1035_v63  ;;  %v187_v5 = vld [vmem:[%s3451_s27 + $0x80] sm:$0xff] }
  0x92   : > { %3151 = vmatmul.msk.f32.gmra.mxu3 %vm246_vm1, %v1037_v6  ;;  %3189 = vmatmul.msk.f32.gmra.mxu0 %vm246_vm1, %v1347_v8 }
  0x94   : > { %v3603_v9 = vpop.f32.mrf.mxu2 }
  0x95   : > { %v3605_v10 = vpop.f32.mrf.mxu3 }
  0x96   : > { %v3607_v11 = vpop.f32.mrf.mxu1 }
  0x97   : > { %v3611_v14 = vpop.f32.mrf.mxu0 }
  0x99   : > { %3076 = vmatmul.msk.f32.gmra.mxu1 %vm246_vm1, %v179_v12  ;;  %3114 = vmatmul.msk.f32.gmra.mxu2 %vm246_vm1, %v1036_v2  ;;  %v1356_v12 = vld [vmem:[%s3451_s27 + $0x93] sm:$0xff] }
  0x9a   : > { %3152 = vmatmul.msk.f32.gmra.mxu3 %vm246_vm1, %v1038_v13  ;;  %3190 = vmatmul.msk.f32.gmra.mxu0 %vm246_vm1, %v1348_v15 }
  0x9c   : > { %v3618_v16 = vpop.f32.mrf.mxu2 }
  0x9d   : > { %v3620_v17 = vpop.f32.mrf.mxu3 }
  0x9e   : > { %v3622_v18 = vpop.f32.mrf.mxu1 }
  0x9f   : > { %v3626_v21 = vpop.f32.mrf.mxu0 }
  0xa1   : > { %3077 = vmatmul.msk.f32.gmra.mxu1 %vm246_vm1, %v180_v19  ;;  %3115 = vmatmul.msk.f32.gmra.mxu2 %vm246_vm1, %v1037_v6  ;;  %v1046_v6 = vld [vmem:[%s3451_s27 + $0x92] sm:$0xff] }
  0xa2   : > { %3153 = vmatmul.msk.f32.gmra.mxu3 %vm246_vm1, %v1039_v20  ;;  %3191 = vmatmul.msk.f32.gmra.mxu0 %vm246_vm1, %v1349_v22 }
  0xa4   : > { %v3633_v23 = vpop.f32.mrf.mxu2 }
  0xa5   : > { %v3635_v24 = vpop.f32.mrf.mxu3 }
  0xa6   : > { %v3637_v25 = vpop.f32.mrf.mxu1 }
  0xa7   : > { %v3641_v28 = vpop.f32.mrf.mxu0 }
  0xa9   : > { %3078 = vmatmul.msk.f32.gmra.mxu1 %vm246_vm1, %v181_v26  ;;  %3116 = vmatmul.msk.f32.gmra.mxu2 %vm246_vm1, %v1038_v13  ;;  %v188_v26 = vld [vmem:[%s3451_s27 + $0x88] sm:$0xff] }
  0xaa   : > { %3154 = vmatmul.msk.f32.gmra.mxu3 %vm246_vm1, %v1040_v27  ;;  %3192 = vmatmul.msk.f32.gmra.mxu0 %vm246_vm1, %v1350_v29  ;;  %v1047_v29 = vld [vmem:[%s3451_s27 + $0x9a] sm:$0xff] }
  0xac   : > { %v3648_v30 = vpop.f32.mrf.mxu2 }
  0xad   : > { %v3650_v31 = vpop.f32.mrf.mxu3 }
  0xae   : > { %v3652_v32 = vpop.f32.mrf.mxu1 }
  0xaf   : > { %v3656_v35 = vpop.f32.mrf.mxu0 }
  0xb1   : > { %3079 = vmatmul.msk.f32.gmra.mxu1 %vm246_vm1, %v182_v33  ;;  %3117 = vmatmul.msk.f32.gmra.mxu2 %vm246_vm1, %v1039_v20 }
  0xb2   : > { %3155 = vmatmul.msk.f32.gmra.mxu3 %vm246_vm1, %v1041_v34  ;;  %3193 = vmatmul.msk.f32.gmra.mxu0 %vm246_vm1, %v1351_v36 }
  0xb4   : > { %v3663_v37 = vpop.f32.mrf.mxu2 }
  0xb5   : > { %v3665_v38 = vpop.f32.mrf.mxu3 }
  0xb6   : > { %v3667_v39 = vpop.f32.mrf.mxu1 }
  0xb7   : > { %v3671_v42 = vpop.f32.mrf.mxu0 }
  0xb9   : > { %3080 = vmatmul.msk.f32.gmra.mxu1 %vm246_vm1, %v183_v40  ;;  %3118 = vmatmul.msk.f32.gmra.mxu2 %vm246_vm1, %v1040_v27 }
  0xba   : > { %3156 = vmatmul.msk.f32.gmra.mxu3 %vm246_vm1, %v1042_v41  ;;  %3194 = vmatmul.msk.f32.gmra.mxu0 %vm246_vm1, %v1352_v43 }
  0xbc   : > { %v3678_v44 = vpop.f32.mrf.mxu2 }
  0xbd   : > { %v3680_v45 = vpop.f32.mrf.mxu3 }
  0xbe   : > { %v3682_v46 = vpop.f32.mrf.mxu1 }
  0xbf   : > { %v3686_v49 = vpop.f32.mrf.mxu0 }
  0xc1   : > { %3081 = vmatmul.msk.f32.gmra.mxu1 %vm246_vm1, %v184_v47  ;;  %3119 = vmatmul.msk.f32.gmra.mxu2 %vm246_vm1, %v1041_v34  ;;  %v1357_v34 = vld [vmem:[%s3451_s27 + $0x9b] sm:$0xff] }
  0xc2   : > { %3157 = vmatmul.msk.f32.gmra.mxu3 %vm246_vm1, %v1043_v48  ;;  %3195 = vmatmul.msk.f32.gmra.mxu0 %vm246_vm1, %v1353_v50 }
  0xc4   : > { %v3693_v51 = vpop.f32.mrf.mxu2 }
  0xc5   : > { %v3695_v52 = vpop.f32.mrf.mxu3 }
  0xc6   : > { %v3697_v53 = vpop.f32.mrf.mxu1 }
  0xc7   : > { %v3701_v56 = vpop.f32.mrf.mxu0 }
  0xc9   : > { %3082 = vmatmul.msk.f32.gmra.mxu1 %vm246_vm1, %v185_v54  ;;  %3120 = vmatmul.msk.f32.gmra.mxu2 %vm246_vm1, %v1042_v41  ;;  %v1048_v54 = vld [vmem:[%s3451_s27 + $0xa2] sm:$0xff] }
  0xca   : > { %3158 = vmatmul.msk.f32.gmra.mxu3 %vm246_vm1, %v1044_v55  ;;  %3196 = vmatmul.msk.f32.gmra.mxu0 %vm246_vm1, %v1354_v57  ;;  %v1358_v57 = vld [vmem:[%s3451_s27 + $0xa3] sm:$0xff] }
  0xcc   : > { %v3708_v58 = vpop.f32.mrf.mxu2 }
  0xcd   : > { %v3710_v59 = vpop.f32.mrf.mxu3 }
  0xce   : > { %v3712_v60 = vpop.f32.mrf.mxu1 }
  0xcf   : > { %v3716_v63 = vpop.f32.mrf.mxu0 }
  0xd1   : > { %3083 = vmatmul.msk.f32.gmra.mxu1 %vm246_vm1, %v186_v61  ;;  %3121 = vmatmul.msk.f32.gmra.mxu2 %vm246_vm1, %v1043_v48  ;;  %v189_v48 = vld [vmem:[%s3451_s27 + $0x90] sm:$0xff] }
  0xd2   : > { %3159 = vmatmul.msk.f32.gmra.mxu3 %vm246_vm1, %v1045_v62  ;;  %3197 = vmatmul.msk.f32.gmra.mxu0 %vm246_vm1, %v1355_v0 }
  0xd4   : > { %v3723_v1 = vpop.f32.mrf.mxu2 }
  0xd5   : > { %v3725_v2 = vpop.f32.mrf.mxu3 }
  0xd6   : > { %v612_v3 = vpop.f32.mrf.mxu1 }
  0xd7   : > { %v1506_v8 = vpop.f32.mrf.mxu0  ;;  %v613_v13 = vadd.f32 %v612_v3, %v3596_v7 }
  0xd9   : > { %3084 = vmatmul.msk.f32.gmra.mxu1 %vm246_vm1, %v187_v5  ;;  %3122 = vmatmul.msk.f32.gmra.mxu2 %vm246_vm1, %v1044_v55 }
  0xda   : > { %3160 = vmatmul.msk.f32.gmra.mxu3 %vm246_vm1, %v1046_v6  ;;  %3198 = vmatmul.msk.f32.gmra.mxu0 %vm246_vm1, %v1356_v12 }
  0xdc   : > { %v886_v15 = vpop.f32.mrf.mxu2 }
  0xdd   : > { %v994_v19 = vadd.f32 %v886_v15, %v613_v13  ;;  %v1196_v20 = vpop.f32.mrf.mxu3  ;;  %v1049_v13 = vld [vmem:[%s3451_s27 + $0xaa] sm:$0xff] }
  0xde   : > { %v615_v22 = vpop.f32.mrf.mxu1 }
  0xdf   : > { %v1304_v27 = vadd.f32 %v1196_v20, %v994_v19  ;;  %v1509_v33 = vpop.f32.mrf.mxu0  ;;  %v616_v7 = vadd.f32 %v615_v22, %v3611_v14  ;;  %v1359_v19 = vld [vmem:[%s3451_s27 + $0xab] sm:$0xff] }
  0xe1   : > { %v3738_v36 = vadd.f32 %v1506_v8, %v1304_v27  ;;  %3085 = vmatmul.msk.f32.gmra.mxu1 %vm246_vm1, %v188_v26  ;;  %3123 = vmatmul.msk.f32.gmra.mxu2 %vm246_vm1, %v1045_v62  ;;  %v190_v8 = vld [vmem:[%s3451_s27 + $0x98] sm:$0xff] }
  0xe2   : > { %3161 = vmatmul.msk.f32.gmra.mxu3 %vm246_vm1, %v1047_v29  ;;  %3199 = vmatmul.msk.f32.gmra.mxu0 %vm246_vm1, %v1357_v34 }
  0xe4   : > { %v889_v40 = vpop.f32.mrf.mxu2 }
  0xe5   : > { %v995_v41 = vadd.f32 %v889_v40, %v616_v7  ;;  %v1199_v43 = vpop.f32.mrf.mxu3  ;;  %v1050_v7 = vld [vmem:[%s3451_s27 + $0xb2] sm:$0xff] }
  0xe6   : > { %v618_v47 = vpop.f32.mrf.mxu1 }
  0xe7   : > { %v1305_v50 = vadd.f32 %v1199_v43, %v995_v41  ;;  %v1512_v55 = vpop.f32.mrf.mxu0  ;;  %v619_v14 = vadd.f32 %v618_v47, %v3626_v21  ;;  %v1360_v41 = vld [vmem:[%s3451_s27 + $0xb3] sm:$0xff] }
  0xe9   : > { %v3748_v61 = vadd.f32 %v1509_v33, %v1305_v50  ;;  %3086 = vmatmul.msk.f32.gmra.mxu1 %vm246_vm1, %v189_v48  ;;  %3124 = vmatmul.msk.f32.gmra.mxu2 %vm246_vm1, %v1046_v6  ;;  %v191_v33 = vld [vmem:[%s3451_s27 + $0xa0] sm:$0xff] }
  0xea   : > { %3162 = vmatmul.msk.f32.gmra.mxu3 %vm246_vm1, %v1048_v54  ;;  %3200 = vmatmul.msk.f32.gmra.mxu0 %vm246_vm1, %v1358_v57 }
  0xec   : > { %v892_v62 = vpop.f32.mrf.mxu2 }
  0xed   : > { %v996_v0 = vadd.f32 %v892_v62, %v619_v14  ;;  %v1202_v3 = vpop.f32.mrf.mxu3  ;;  %v1051_v14 = vld [vmem:[%s3451_s27 + $0xba] sm:$0xff] }
  0xee   : > { %v621_v5 = vpop.f32.mrf.mxu1 }
  0xef   : > { %v1306_v12 = vadd.f32 %v1202_v3, %v996_v0  ;;  %v1515_v15 = vpop.f32.mrf.mxu0  ;;  %v622_v21 = vadd.f32 %v621_v5, %v3641_v28  ;;  %v1361_v0 = vld [vmem:[%s3451_s27 + $0xbb] sm:$0xff] }
  0xf1   : > { %v3758_v20 = vadd.f32 %v1512_v55, %v1306_v12  ;;  %3087 = vmatmul.msk.f32.gmra.mxu1 %vm246_vm1, %v190_v8  ;;  %3125 = vmatmul.msk.f32.gmra.mxu2 %vm246_vm1, %v1047_v29  ;;  %v192_v55 = vld [vmem:[%s3451_s27 + $0xa8] sm:$0xff] }
  0xf2   : > { %3163 = vmatmul.msk.f32.gmra.mxu3 %vm246_vm1, %v1049_v13  ;;  %3201 = vmatmul.msk.f32.gmra.mxu0 %vm246_vm1, %v1359_v19 }
  0xf4   : > { %v895_v6 = vpop.f32.mrf.mxu2 }
  0xf5   : > { %v997_v22 = vadd.f32 %v895_v6, %v622_v21  ;;  %v1205_v26 = vpop.f32.mrf.mxu3  ;;  %v1052_v21 = vld [vmem:[%s3451_s27 + $0xc2] sm:$0xff] }
  0xf6   : > { %v624_v27 = vpop.f32.mrf.mxu1 }
  0xf7   : > { %v1307_v34 = vadd.f32 %v1205_v26, %v997_v22  ;;  %v1518_v40 = vpop.f32.mrf.mxu0  ;;  %v625_v28 = vadd.f32 %v624_v27, %v3656_v35  ;;  %v1362_v22 = vld [vmem:[%s3451_s27 + $0xc3] sm:$0xff] }
  0xf9   : > { %v3768_v43 = vadd.f32 %v1515_v15, %v1307_v34  ;;  %3088 = vmatmul.msk.f32.gmra.mxu1 %vm246_vm1, %v191_v33  ;;  %3126 = vmatmul.msk.f32.gmra.mxu2 %vm246_vm1, %v1048_v54  ;;  %v193_v15 = vld [vmem:[%s3451_s27 + $0xb0] sm:$0xff] }
  0xfa   : > { %3164 = vmatmul.msk.f32.gmra.mxu3 %vm246_vm1, %v1050_v7  ;;  %3202 = vmatmul.msk.f32.gmra.mxu0 %vm246_vm1, %v1360_v41 }
  0xfc   : > { %v898_v29 = vpop.f32.mrf.mxu2 }
  0xfd   : > { %v998_v47 = vadd.f32 %v898_v29, %v625_v28  ;;  %v1208_v48 = vpop.f32.mrf.mxu3  ;;  %v1053_v28 = vld [vmem:[%s3451_s27 + $0xca] sm:$0xff] }
  0xfe   : > { %v627_v50 = vpop.f32.mrf.mxu1 }
  0xff   : > { %v1308_v57 = vadd.f32 %v1208_v48, %v998_v47  ;;  %v1521_v62 = vpop.f32.mrf.mxu0  ;;  %v628_v35 = vadd.f32 %v627_v50, %v3671_v42  ;;  %v1363_v47 = vld [vmem:[%s3451_s27 + $0xcb] sm:$0xff] }
 0x101   : > { %v3778_v3 = vadd.f32 %v1518_v40, %v1308_v57  ;;  %3089 = vmatmul.msk.f32.gmra.mxu1 %vm246_vm1, %v192_v55  ;;  %3127 = vmatmul.msk.f32.gmra.mxu2 %vm246_vm1, %v1049_v13  ;;  %v194_v40 = vld [vmem:[%s3451_s27 + $0xb8] sm:$0xff] }
 0x102   : > { %3165 = vmatmul.msk.f32.gmra.mxu3 %vm246_vm1, %v1051_v14  ;;  %3203 = vmatmul.msk.f32.gmra.mxu0 %vm246_vm1, %v1361_v0 }
 0x104   : > { %v901_v54 = vpop.f32.mrf.mxu2 }
 0x105   : > { %v999_v5 = vadd.f32 %v901_v54, %v628_v35  ;;  %v1211_v8 = vpop.f32.mrf.mxu3  ;;  %v1054_v35 = vld [vmem:[%s3451_s27 + $0xd2] sm:$0xff] }
 0x106   : > { %v630_v12 = vpop.f32.mrf.mxu1 }
 0x107   : > { %v1309_v19 = vadd.f32 %v1211_v8, %v999_v5  ;;  %v1524_v6 = vpop.f32.mrf.mxu0  ;;  %v631_v42 = vadd.f32 %v630_v12, %v3686_v49  ;;  %v1364_v5 = vld [vmem:[%s3451_s27 + $0xd3] sm:$0xff] }
 0x109   : > { %v3788_v26 = vadd.f32 %v1521_v62, %v1309_v19  ;;  %3090 = vmatmul.msk.f32.gmra.mxu1 %vm246_vm1, %v193_v15  ;;  %3128 = vmatmul.msk.f32.gmra.mxu2 %vm246_vm1, %v1050_v7  ;;  %v195_v62 = vld [vmem:[%s3451_s27 + $0xc0] sm:$0xff] }
 0x10a   : > { %3166 = vmatmul.msk.f32.gmra.mxu3 %vm246_vm1, %v1052_v21  ;;  %3204 = vmatmul.msk.f32.gmra.mxu0 %vm246_vm1, %v1362_v22 }
 0x10c   : > { %v904_v13 = vpop.f32.mrf.mxu2 }
 0x10d   : > { %v1000_v27 = vadd.f32 %v904_v13, %v631_v42  ;;  %v1214_v33 = vpop.f32.mrf.mxu3  ;;  %v1055_v42 = vld [vmem:[%s3451_s27 + $0xda] sm:$0xff] }
 0x10e   : > { %v633_v34 = vpop.f32.mrf.mxu1 }
 0x10f   : > { %v1310_v41 = vadd.f32 %v1214_v33, %v1000_v27  ;;  %v1527_v29 = vpop.f32.mrf.mxu0  ;;  %v634_v49 = vadd.f32 %v633_v34, %v3701_v56  ;;  %v1365_v27 = vld [vmem:[%s3451_s27 + $0xdb] sm:$0xff] }
 0x111   : > { %v3798_v48 = vadd.f32 %v1524_v6, %v1310_v41  ;;  %3091 = vmatmul.msk.f32.gmra.mxu1 %vm246_vm1, %v194_v40  ;;  %3129 = vmatmul.msk.f32.gmra.mxu2 %vm246_vm1, %v1051_v14  ;;  %v196_v6 = vld [vmem:[%s3451_s27 + $0xc8] sm:$0xff] }
 0x112   : > { %3167 = vmatmul.msk.f32.gmra.mxu3 %vm246_vm1, %v1053_v28  ;;  %3205 = vmatmul.msk.f32.gmra.mxu0 %vm246_vm1, %v1363_v47 }
 0x114   : > { %v907_v7 = vpop.f32.mrf.mxu2 }
 0x115   : > { %v1001_v50 = vadd.f32 %v907_v7, %v634_v49  ;;  %v1217_v55 = vpop.f32.mrf.mxu3  ;;  %v1056_v49 = vld [vmem:[%s3451_s27 + $0xe2] sm:$0xff] }
 0x116   : > { %v636_v57 = vpop.f32.mrf.mxu1 }
 0x117   : > { %v1311_v0 = vadd.f32 %v1217_v55, %v1001_v50  ;;  %v1530_v54 = vpop.f32.mrf.mxu0  ;;  %v637_v56 = vadd.f32 %v636_v57, %v3716_v63  ;;  %v1366_v50 = vld [vmem:[%s3451_s27 + $0xe3] sm:$0xff] }
 0x119   : > { %v3808_v8 = vadd.f32 %v1527_v29, %v1311_v0  ;;  %3092 = vmatmul.msk.f32.gmra.mxu1 %vm246_vm1, %v195_v62  ;;  %3130 = vmatmul.msk.f32.gmra.mxu2 %vm246_vm1, %v1052_v21  ;;  %v197_v29 = vld [vmem:[%s3451_s27 + $0xd0] sm:$0xff] }
 0x11a   : > { %3168 = vmatmul.msk.f32.gmra.mxu3 %vm246_vm1, %v1054_v35  ;;  %3206 = vmatmul.msk.f32.gmra.mxu0 %vm246_vm1, %v1364_v5 }
 0x11c   : > { %v910_v14 = vpop.f32.mrf.mxu2 }
 0x11d   : > { %v1002_v12 = vadd.f32 %v910_v14, %v637_v56  ;;  %v1220_v15 = vpop.f32.mrf.mxu3  ;;  %v1057_v56 = vld [vmem:[%s3451_s27 + $0xea] sm:$0xff] }
 0x11e   : > { %v639_v19 = vpop.f32.mrf.mxu1 }
 0x11f   : > { %v1312_v22 = vadd.f32 %v1220_v15, %v1002_v12  ;;  %v1533_v13 = vpop.f32.mrf.mxu0  ;;  %v640_v63 = vadd.f32 %v639_v19, %v3592_v4  ;;  %v1367_v12 = vld [vmem:[%s3451_s27 + $0xeb] sm:$0xff] }
 0x121   : > { %v3818_v33 = vadd.f32 %v1530_v54, %v1312_v22  ;;  %3093 = vmatmul.msk.f32.gmra.mxu1 %vm246_vm1, %v196_v6  ;;  %3131 = vmatmul.msk.f32.gmra.mxu2 %vm246_vm1, %v1053_v28  ;;  %v198_v54 = vld [vmem:[%s3451_s27 + $0xd8] sm:$0xff] }
 0x122   : > { %3169 = vmatmul.msk.f32.gmra.mxu3 %vm246_vm1, %v1055_v42  ;;  %3207 = vmatmul.msk.f32.gmra.mxu0 %vm246_vm1, %v1365_v27 }
 0x124   : > { %v913_v21 = vpop.f32.mrf.mxu2 }
 0x125   : > { %v1003_v34 = vadd.f32 %v913_v21, %v640_v63  ;;  %v1223_v40 = vpop.f32.mrf.mxu3  ;;  %v1058_v63 = vld [vmem:[%s3451_s27 + $0xf2] sm:$0xff] }
 0x126   : > { %v642_v41 = vpop.f32.mrf.mxu1 }
 0x127   : > { %v1313_v47 = vadd.f32 %v1223_v40, %v1003_v34  ;;  %v1536_v7 = vpop.f32.mrf.mxu0  ;;  %v643_v4 = vadd.f32 %v642_v41, %v3607_v11  ;;  %v1368_v34 = vld [vmem:[%s3451_s27 + $0xf3] sm:$0xff] }
 0x129   : > { %v3828_v55 = vadd.f32 %v1533_v13, %v1313_v47  ;;  %3094 = vmatmul.msk.f32.gmra.mxu1 %vm246_vm1, %v197_v29  ;;  %3132 = vmatmul.msk.f32.gmra.mxu2 %vm246_vm1, %v1054_v35  ;;  %v199_v13 = vld [vmem:[%s3451_s27 + $0xe0] sm:$0xff] }
 0x12a   : > { %3170 = vmatmul.msk.f32.gmra.mxu3 %vm246_vm1, %v1056_v49  ;;  %3208 = vmatmul.msk.f32.gmra.mxu0 %vm246_vm1, %v1366_v50 }
 0x12c   : > { %v916_v28 = vpop.f32.mrf.mxu2 }
 0x12d   : > { %v1004_v57 = vadd.f32 %v916_v28, %v643_v4  ;;  %v1226_v62 = vpop.f32.mrf.mxu3  ;;  %v1059_v4 = vld [vmem:[%s3451_s27 + $0xfa] sm:$0xff] }
 0x12e   : > { %v645_v0 = vpop.f32.mrf.mxu1 }
 0x12f   : > { %v1314_v5 = vadd.f32 %v1226_v62, %v1004_v57  ;;  %v1539_v14 = vpop.f32.mrf.mxu0  ;;  %v646_v11 = vadd.f32 %v645_v0, %v3622_v18  ;;  %v1369_v57 = vld [vmem:[%s3451_s27 + $0xfb] sm:$0xff] }
 0x131   : > { %v3838_v15 = vadd.f32 %v1536_v7, %v1314_v5  ;;  %3095 = vmatmul.msk.f32.gmra.mxu1 %vm246_vm1, %v198_v54  ;;  %3133 = vmatmul.msk.f32.gmra.mxu2 %vm246_vm1, %v1055_v42  ;;  %v200_v7 = vld [vmem:[%s3451_s27 + $0xe8] sm:$0xff] }
 0x132   : > { %3171 = vmatmul.msk.f32.gmra.mxu3 %vm246_vm1, %v1057_v56  ;;  %3209 = vmatmul.msk.f32.gmra.mxu0 %vm246_vm1, %v1367_v12 }
 0x134   : > { %v919_v35 = vpop.f32.mrf.mxu2 }
 0x135   : > { %v1005_v19 = vadd.f32 %v919_v35, %v646_v11  ;;  %v1229_v6 = vpop.f32.mrf.mxu3  ;;  %v1060_v11 = vld [vmem:[%s3451_s27 + $0x102] sm:$0xff] }
 0x136   : > { %v648_v22 = vpop.f32.mrf.mxu1 }
 0x137   : > { %v1315_v27 = vadd.f32 %v1229_v6, %v1005_v19  ;;  %v1542_v21 = vpop.f32.mrf.mxu0  ;;  %v649_v18 = vadd.f32 %v648_v22, %v3637_v25  ;;  %v1370_v19 = vld [vmem:[%s3451_s27 + $0x103] sm:$0xff] }
 0x139   : > { %v3848_v40 = vadd.f32 %v1539_v14, %v1315_v27  ;;  %3096 = vmatmul.msk.f32.gmra.mxu1 %vm246_vm1, %v199_v13  ;;  %3134 = vmatmul.msk.f32.gmra.mxu2 %vm246_vm1, %v1056_v49  ;;  %v201_v14 = vld [vmem:[%s3451_s27 + $0xf0] sm:$0xff] }
 0x13a   : > { %3172 = vmatmul.msk.f32.gmra.mxu3 %vm246_vm1, %v1058_v63  ;;  %3210 = vmatmul.msk.f32.gmra.mxu0 %vm246_vm1, %v1368_v34 }
 0x13c   : > { %v922_v42 = vpop.f32.mrf.mxu2 }
 0x13d   : > { %v1006_v41 = vadd.f32 %v922_v42, %v649_v18  ;;  %v1232_v29 = vpop.f32.mrf.mxu3  ;;  %v1061_v18 = vld [vmem:[%s3451_s27 + $0x10a] sm:$0xff] }
 0x13e   : > { %v651_v47 = vpop.f32.mrf.mxu1 }
 0x13f   : > { %v1316_v50 = vadd.f32 %v1232_v29, %v1006_v41  ;;  %v1545_v28 = vpop.f32.mrf.mxu0  ;;  %v652_v25 = vadd.f32 %v651_v47, %v3652_v32  ;;  %v1371_v41 = vld [vmem:[%s3451_s27 + $0x10b] sm:$0xff] }
 0x141   : > { %v3858_v62 = vadd.f32 %v1542_v21, %v1316_v50  ;;  %3097 = vmatmul.msk.f32.gmra.mxu1 %vm246_vm1, %v200_v7  ;;  %3135 = vmatmul.msk.f32.gmra.mxu2 %vm246_vm1, %v1057_v56  ;;  %v202_v21 = vld [vmem:[%s3451_s27 + $0xf8] sm:$0xff] }
 0x142   : > { %3173 = vmatmul.msk.f32.gmra.mxu3 %vm246_vm1, %v1059_v4  ;;  %3211 = vmatmul.msk.f32.gmra.mxu0 %vm246_vm1, %v1369_v57 }
 0x144   : > { %v925_v49 = vpop.f32.mrf.mxu2 }
 0x145   : > { %v1007_v0 = vadd.f32 %v925_v49, %v652_v25  ;;  %v1235_v54 = vpop.f32.mrf.mxu3  ;;  %v1062_v25 = vld [vmem:[%s3451_s27 + $0x112] sm:$0xff] }
 0x146   : > { %v654_v5 = vpop.f32.mrf.mxu1 }
 0x147   : > { %v1317_v12 = vadd.f32 %v1235_v54, %v1007_v0  ;;  %v1548_v35 = vpop.f32.mrf.mxu0  ;;  %v655_v32 = vadd.f32 %v654_v5, %v3667_v39  ;;  %v1372_v0 = vld [vmem:[%s3451_s27 + $0x113] sm:$0xff] }
 0x149   : > { %v3868_v6 = vadd.f32 %v1545_v28, %v1317_v12  ;;  %3098 = vmatmul.msk.f32.gmra.mxu1 %vm246_vm1, %v201_v14  ;;  %3136 = vmatmul.msk.f32.gmra.mxu2 %vm246_vm1, %v1058_v63  ;;  %v203_v28 = vld [vmem:[%s3451_s27 + $0x100] sm:$0xff] }
 0x14a   : > { %3174 = vmatmul.msk.f32.gmra.mxu3 %vm246_vm1, %v1060_v11  ;;  %3212 = vmatmul.msk.f32.gmra.mxu0 %vm246_vm1, %v1370_v19 }
 0x14c   : > { %v928_v56 = vpop.f32.mrf.mxu2 }
 0x14d   : > { %v1008_v22 = vadd.f32 %v928_v56, %v655_v32  ;;  %v1238_v13 = vpop.f32.mrf.mxu3  ;;  %v1063_v32 = vld [vmem:[%s3451_s27 + $0x11a] sm:$0xff] }
 0x14e   : > { %v657_v27 = vpop.f32.mrf.mxu1 }
 0x14f   : > { %v1318_v34 = vadd.f32 %v1238_v13, %v1008_v22  ;;  %v1551_v42 = vpop.f32.mrf.mxu0  ;;  %v658_v39 = vadd.f32 %v657_v27, %v3682_v46  ;;  %v1373_v22 = vld [vmem:[%s3451_s27 + $0x11b] sm:$0xff] }
 0x151   : > { %v3878_v29 = vadd.f32 %v1548_v35, %v1318_v34  ;;  %3099 = vmatmul.msk.f32.gmra.mxu1 %vm246_vm1, %v202_v21  ;;  %3137 = vmatmul.msk.f32.gmra.mxu2 %vm246_vm1, %v1059_v4  ;;  %v204_v35 = vld [vmem:[%s3451_s27 + $0x108] sm:$0xff] }
 0x152   : > { %3175 = vmatmul.msk.f32.gmra.mxu3 %vm246_vm1, %v1061_v18  ;;  %3213 = vmatmul.msk.f32.gmra.mxu0 %vm246_vm1, %v1371_v41 }
 0x154   : > { %v931_v63 = vpop.f32.mrf.mxu2 }
 0x155   : > { %v1009_v47 = vadd.f32 %v931_v63, %v658_v39  ;;  %v1241_v7 = vpop.f32.mrf.mxu3  ;;  %v1064_v39 = vld [vmem:[%s3451_s27 + $0x122] sm:$0xff] }
 0x156   : > { %v660_v50 = vpop.f32.mrf.mxu1 }
 0x157   : > { %v1319_v57 = vadd.f32 %v1241_v7, %v1009_v47  ;;  %v1554_v49 = vpop.f32.mrf.mxu0  ;;  %v661_v46 = vadd.f32 %v660_v50, %v3697_v53  ;;  %v1374_v47 = vld [vmem:[%s3451_s27 + $0x123] sm:$0xff] }
 0x159   : > { %v3888_v54 = vadd.f32 %v1551_v42, %v1319_v57  ;;  %3100 = vmatmul.msk.f32.gmra.mxu1 %vm246_vm1, %v203_v28  ;;  %3138 = vmatmul.msk.f32.gmra.mxu2 %vm246_vm1, %v1060_v11  ;;  %v205_v42 = vld [vmem:[%s3451_s27 + $0x110] sm:$0xff] }
 0x15a   : > { %3176 = vmatmul.msk.f32.gmra.mxu3 %vm246_vm1, %v1062_v25  ;;  %3214 = vmatmul.msk.f32.gmra.mxu0 %vm246_vm1, %v1372_v0 }
 0x15c   : > { %v934_v4 = vpop.f32.mrf.mxu2 }
 0x15d   : > { %v1010_v5 = vadd.f32 %v934_v4, %v661_v46  ;;  %v1244_v14 = vpop.f32.mrf.mxu3  ;;  %v1065_v46 = vld [vmem:[%s3451_s27 + $0x12a] sm:$0xff] }
 0x15e   : > { %v663_v12 = vpop.f32.mrf.mxu1 }
 0x15f   : > { %v1320_v19 = vadd.f32 %v1244_v14, %v1010_v5  ;;  %v1557_v56 = vpop.f32.mrf.mxu0  ;;  %v664_v53 = vadd.f32 %v663_v12, %v3712_v60  ;;  %v1375_v5 = vld [vmem:[%s3451_s27 + $0x12b] sm:$0xff] }
 0x161   : > { %v3898_v13 = vadd.f32 %v1554_v49, %v1320_v19  ;;  %3101 = vmatmul.msk.f32.gmra.mxu1 %vm246_vm1, %v204_v35  ;;  %3139 = vmatmul.msk.f32.gmra.mxu2 %vm246_vm1, %v1061_v18  ;;  %v206_v49 = vld [vmem:[%s3451_s27 + $0x118] sm:$0xff] }
 0x162   : > { %3177 = vmatmul.msk.f32.gmra.mxu3 %vm246_vm1, %v1063_v32  ;;  %3215 = vmatmul.msk.f32.gmra.mxu0 %vm246_vm1, %v1373_v22  ;;  %v1960_v22 = vld [vmem:[%s3451_s27 + $0x24] sm:$0xff] }
 0x164   : > { %v937_v11 = vpop.f32.mrf.mxu2 }
 0x165   : > { %v1011_v27 = vadd.f32 %v937_v11, %v664_v53  ;;  %v1247_v21 = vpop.f32.mrf.mxu3  ;;  %v2270_v11 = vld [vmem:[%s3451_s27 + $0x25] sm:$0xff] }
 0x166   : > { %v666_v34 = vpop.f32.mrf.mxu1 }
 0x167   : > { %v1321_v41 = vadd.f32 %v1247_v21, %v1011_v27  ;;  %v1560_v63 = vpop.f32.mrf.mxu0  ;;  %v667_v60 = vadd.f32 %v666_v34, %v3603_v9  ;;  %v2580_v21 = vld [vmem:[%s3451_s27 + $0x26] sm:$0xff] }
 0x169   : > { %v3908_v7 = vadd.f32 %v1557_v56, %v1321_v41  ;;  %3102 = vmatmul.msk.f32.gmra.mxu1 %vm246_vm1, %v205_v42  ;;  %3140 = vmatmul.msk.f32.gmra.mxu2 %vm246_vm1, %v1062_v25  ;;  %v1650_v56 = vld [vmem:[%s3451_s27 + $0x14] sm:$0xff] }
 0x16a   : > { %3178 = vmatmul.msk.f32.gmra.mxu3 %vm246_vm1, %v1064_v39  ;;  %3216 = vmatmul.msk.f32.gmra.mxu0 %vm246_vm1, %v1374_v47  ;;  %v1961_v47 = vld [vmem:[%s3451_s27 + $0x2c] sm:$0xff] }
 0x16c   : > { %v940_v18 = vpop.f32.mrf.mxu2 }
 0x16d   : > { %v1012_v50 = vadd.f32 %v940_v18, %v667_v60  ;;  %v1250_v28 = vpop.f32.mrf.mxu3  ;;  %v2271_v18 = vld [vmem:[%s3451_s27 + $0x2d] sm:$0xff] }
 0x16e   : > { %v669_v57 = vpop.f32.mrf.mxu1 }
 0x16f   : > { %v1322_v0 = vadd.f32 %v1250_v28, %v1012_v50  ;;  %v1563_v4 = vpop.f32.mrf.mxu0  ;;  %v670_v9 = vadd.f32 %v669_v57, %v3618_v16  ;;  %v2581_v28 = vld [vmem:[%s3451_s27 + $0x2e] sm:$0xff] }
 0x171   : > { %v3918_v25 = vadd.f32 %v1560_v63, %v1322_v0  ;;  %3103 = vmatmul.msk.f32.gmra.mxu1 %vm246_vm1, %v206_v49  ;;  %3141 = vmatmul.msk.f32.gmra.mxu2 %vm246_vm1, %v1063_v32  ;;  %v1651_v63 = vld [vmem:[%s3451_s27 + $0x1c] sm:$0xff] }
 0x172   : > { %3179 = vmatmul.msk.f32.gmra.mxu3 %vm246_vm1, %v1065_v46  ;;  %3217 = vmatmul.msk.f32.gmra.mxu0 %vm246_vm1, %v1375_v5  ;;  %v1962_v5 = vld [vmem:[%s3451_s27 + $0x34] sm:$0xff] }
 0x174   : > { %v943_v14 = vpop.f32.mrf.mxu2 }
 0x175   : > { %v1013_v12 = vadd.f32 %v943_v14, %v670_v9  ;;  %v1253_v35 = vpop.f32.mrf.mxu3  ;;  %v2272_v14 = vld [vmem:[%s3451_s27 + $0x35] sm:$0xff] }
 0x176   : > { %v672_v19 = vpop.f32.mrf.mxu1 }
 0x177   : > { %v1323_v53 = vadd.f32 %v1253_v35, %v1013_v12  ;;  %v1566_v27 = vpop.f32.mrf.mxu0  ;;  %v673_v16 = vadd.f32 %v672_v19, %v3633_v23  ;;  %v2582_v35 = vld [vmem:[%s3451_s27 + $0x36] sm:$0xff] }
 0x179   : > { %v3929_v32 = vadd.f32 %v1563_v4, %v1323_v53  ;;  %3220 = vmatmul.msk.f32.vlgmr.msra.gmra.mxu1 %vm246_vm1, %v1650_v56  ;;  %3258 = vmatmul.msk.f32.vlgmr.msra.gmra.mxu2 %vm246_vm1, %v1960_v22 }
 0x17a   : > { %3296 = vmatmul.msk.f32.vlgmr.msra.gmra.mxu3 %vm246_vm1, %v2270_v11  ;;  %3334 = vmatmul.msk.f32.vlgmr.msra.gmra.mxu0 %vm246_vm1, %v2580_v21  ;;  %v1963_v21 = vld [vmem:[%s3451_s27 + $0x3c] sm:$0xff] }
 0x17c   : > { %v946_v34 = vpop.f32.mrf.mxu2 }
 0x17d   : > { %v1014_v42 = vadd.f32 %v946_v34, %v673_v16  ;;  %v1256_v41 = vpop.f32.mrf.mxu3  ;;  %v2273_v34 = vld [vmem:[%s3451_s27 + $0x3d] sm:$0xff] }
 0x17e   : > { %v675_v39 = vpop.f32.mrf.mxu1 }
 0x17f   : > { %v1324_v60 = vadd.f32 %v1256_v41, %v1014_v42  ;;  %v1569_v50 = vpop.f32.mrf.mxu0  ;;  %v676_v23 = vadd.f32 %v675_v39, %v3648_v30 }
 0x181   : > { %v3940_v57 = vadd.f32 %v1566_v27, %v1324_v60  ;;  %3221 = vmatmul.msk.f32.gmra.mxu1 %vm246_vm1, %v1651_v63  ;;  %3259 = vmatmul.msk.f32.gmra.mxu2 %vm246_vm1, %v1961_v47 }
 0x182   : > { %3297 = vmatmul.msk.f32.gmra.mxu3 %vm246_vm1, %v2271_v18  ;;  %3335 = vmatmul.msk.f32.gmra.mxu0 %vm246_vm1, %v2581_v28 }
 0x184   : > { %v949_v49 = vpop.f32.mrf.mxu2 }
 0x185   : > { %v1015_v0 = vadd.f32 %v949_v49, %v676_v23  ;;  %v1259_v46 = vpop.f32.mrf.mxu3  ;;  %v2274_v23 = vld [vmem:[%s3451_s27 + $0x45] sm:$0xff] }
 0x186   : > { %v678_v4 = vpop.f32.mrf.mxu1 }
 0x187   : > { %v1325_v9 = vadd.f32 %v1259_v46, %v1015_v0  ;;  %v1572_v12 = vpop.f32.mrf.mxu0  ;;  %v679_v30 = vadd.f32 %v678_v4, %v3663_v37 }
 0x189   : > { %v3950_v19 = vadd.f32 %v1569_v50, %v1325_v9  ;;  %3222 = vmatmul.msk.f32.gmra.mxu1 %vm246_vm1, %v1960_v22  ;;  %3260 = vmatmul.msk.f32.gmra.mxu2 %vm246_vm1, %v1962_v5  ;;  %v2583_v22 = vld [vmem:[%s3451_s27 + $0x3e] sm:$0xff] }
 0x18a   : > { %3298 = vmatmul.msk.f32.gmra.mxu3 %vm246_vm1, %v2272_v14  ;;  %3336 = vmatmul.msk.f32.gmra.mxu0 %vm246_vm1, %v2582_v35  ;;  %v1964_v50 = vld [vmem:[%s3451_s27 + $0x44] sm:$0xff] }
 0x18c   : > { %v952_v56 = vpop.f32.mrf.mxu2 }
 0x18d   : > { %v1016_v53 = vadd.f32 %v952_v56, %v679_v30  ;;  %v1262_v11 = vpop.f32.mrf.mxu3  ;;  %v2275_v30 = vld [vmem:[%s3451_s27 + $0x4d] sm:$0xff] }
 0x18e   : > { %v681_v27 = vpop.f32.mrf.mxu1 }
 0x18f   : > { %v1326_v16 = vadd.f32 %v1262_v11, %v1016_v53  ;;  %v1575_v42 = vpop.f32.mrf.mxu0  ;;  %v682_v37 = vadd.f32 %v681_v27, %v3678_v44 }
 0x191   : > { %v3960_v41 = vadd.f32 %v1572_v12, %v1326_v16  ;;  %3223 = vmatmul.msk.f32.gmra.mxu1 %vm246_vm1, %v1961_v47  ;;  %3261 = vmatmul.msk.f32.gmra.mxu2 %vm246_vm1, %v1963_v21  ;;  %v2584_v47 = vld [vmem:[%s3451_s27 + $0x46] sm:$0xff] }
 0x192   : > { %3299 = vmatmul.msk.f32.gmra.mxu3 %vm246_vm1, %v2273_v34  ;;  %3337 = vmatmul.msk.f32.gmra.mxu0 %vm246_vm1, %v2583_v22  ;;  %v1965_v12 = vld [vmem:[%s3451_s27 + $0x4c] sm:$0xff] }
 0x194   : > { %v955_v39 = vpop.f32.mrf.mxu2 }
 0x195   : > { %v1017_v63 = vadd.f32 %v955_v39, %v682_v37  ;;  %v1265_v60 = vpop.f32.mrf.mxu3  ;;  %v2276_v37 = vld [vmem:[%s3451_s27 + $0x55] sm:$0xff] }
 0x196   : > { %v684_v18 = vpop.f32.mrf.mxu1 }
 0x197   : > { %v1327_v28 = vadd.f32 %v1265_v60, %v1017_v63  ;;  %v1578_v49 = vpop.f32.mrf.mxu0  ;;  %v685_v44 = vadd.f32 %v684_v18, %v3693_v51 }
 0x199   : > { %v3970_v0 = vadd.f32 %v1575_v42, %v1327_v28  ;;  %3224 = vmatmul.msk.f32.gmra.mxu1 %vm246_vm1, %v1962_v5  ;;  %3262 = vmatmul.msk.f32.gmra.mxu2 %vm246_vm1, %v1964_v50  ;;  %v2585_v5 = vld [vmem:[%s3451_s27 + $0x4e] sm:$0xff] }
 0x19a   : > { %3300 = vmatmul.msk.f32.gmra.mxu3 %vm246_vm1, %v2274_v23  ;;  %3338 = vmatmul.msk.f32.gmra.mxu0 %vm246_vm1, %v2584_v47  ;;  %v1966_v42 = vld [vmem:[%s3451_s27 + $0x54] sm:$0xff] }
 0x19c   : > { %v958_v46 = vpop.f32.mrf.mxu2 }
 0x19d   : > { %v1018_v4 = vadd.f32 %v958_v46, %v685_v44  ;;  %v1268_v9 = vpop.f32.mrf.mxu3  ;;  %v2277_v44 = vld [vmem:[%s3451_s27 + $0x5d] sm:$0xff] }
 0x19e   : > { %v687_v14 = vpop.f32.mrf.mxu1 }
 0x19f   : > { %v1328_v35 = vadd.f32 %v1268_v9, %v1018_v4  ;;  %v1581_v56 = vpop.f32.mrf.mxu0  ;;  %v688_v51 = vadd.f32 %v687_v14, %v3708_v58 }
 0x1a1   : > { %v3980_v53 = vadd.f32 %v1578_v49, %v1328_v35  ;;  %3225 = vmatmul.msk.f32.gmra.mxu1 %vm246_vm1, %v1963_v21  ;;  %3263 = vmatmul.msk.f32.gmra.mxu2 %vm246_vm1, %v1965_v12  ;;  %v2586_v21 = vld [vmem:[%s3451_s27 + $0x56] sm:$0xff] }
 0x1a2   : > { %3301 = vmatmul.msk.f32.gmra.mxu3 %vm246_vm1, %v2275_v30  ;;  %3339 = vmatmul.msk.f32.gmra.mxu0 %vm246_vm1, %v2585_v5  ;;  %v1967_v49 = vld [vmem:[%s3451_s27 + $0x5c] sm:$0xff] }
 0x1a4   : > { %v961_v11 = vpop.f32.mrf.mxu2 }
 0x1a5   : > { %v1019_v27 = vadd.f32 %v961_v11, %v688_v51  ;;  %v1271_v16 = vpop.f32.mrf.mxu3  ;;  %v2278_v51 = vld [vmem:[%s3451_s27 + $0x65] sm:$0xff] }
 0x1a6   : > { %v690_v34 = vpop.f32.mrf.mxu1 }
 0x1a7   : > { %v1329_v22 = vadd.f32 %v1271_v16, %v1019_v27  ;;  %v1584_v39 = vpop.f32.mrf.mxu0  ;;  %v691_v58 = vadd.f32 %v690_v34, %v3723_v1 }
 0x1a9   : > { %v3990_v63 = vadd.f32 %v1581_v56, %v1329_v22  ;;  %3226 = vmatmul.msk.f32.gmra.mxu1 %vm246_vm1, %v1964_v50  ;;  %3264 = vmatmul.msk.f32.gmra.mxu2 %vm246_vm1, %v1966_v42  ;;  %v2587_v50 = vld [vmem:[%s3451_s27 + $0x5e] sm:$0xff] }
 0x1aa   : > { %3302 = vmatmul.msk.f32.gmra.mxu3 %vm246_vm1, %v2276_v37  ;;  %3340 = vmatmul.msk.f32.gmra.mxu0 %vm246_vm1, %v2586_v21  ;;  %v1968_v56 = vld [vmem:[%s3451_s27 + $0x64] sm:$0xff] }
 0x1ac   : > { %v964_v60 = vpop.f32.mrf.mxu2 }
 0x1ad   : > { %v1020_v18 = vadd.f32 %v964_v60, %v691_v58  ;;  %v1274_v28 = vpop.f32.mrf.mxu3  ;;  %v2279_v58 = vld [vmem:[%s3451_s27 + $0x6d] sm:$0xff] }
 0x1ae   : > { %v693_v23 = vpop.f32.mrf.mxu1 }
 0x1af   : > { %v1330_v47 = vadd.f32 %v1274_v28, %v1020_v18  ;;  %v1587_v46 = vpop.f32.mrf.mxu0  ;;  %v694_v1 = vadd.f32 %v693_v23, %v3605_v10 }
 0x1b1   : > { %v4000_v4 = vadd.f32 %v1584_v39, %v1330_v47  ;;  %3227 = vmatmul.msk.f32.gmra.mxu1 %vm246_vm1, %v1965_v12  ;;  %3265 = vmatmul.msk.f32.gmra.mxu2 %vm246_vm1, %v1967_v49  ;;  %v2588_v12 = vld [vmem:[%s3451_s27 + $0x66] sm:$0xff] }
 0x1b2   : > { %3303 = vmatmul.msk.f32.gmra.mxu3 %vm246_vm1, %v2277_v44  ;;  %3341 = vmatmul.msk.f32.gmra.mxu0 %vm246_vm1, %v2587_v50  ;;  %v1969_v39 = vld [vmem:[%s3451_s27 + $0x6c] sm:$0xff] }
 0x1b4   : > { %v967_v9 = vpop.f32.mrf.mxu2 }
 0x1b5   : > { %v1021_v14 = vadd.f32 %v967_v9, %v694_v1  ;;  %v1277_v35 = vpop.f32.mrf.mxu3  ;;  %v2280_v1 = vld [vmem:[%s3451_s27 + $0x75] sm:$0xff] }
 0x1b6   : > { %v696_v30 = vpop.f32.mrf.mxu1 }
 0x1b7   : > { %v1331_v5 = vadd.f32 %v1277_v35, %v1021_v14  ;;  %v1590_v11 = vpop.f32.mrf.mxu0  ;;  %v697_v10 = vadd.f32 %v696_v30, %v3620_v17 }
 0x1b9   : > { %v4010_v27 = vadd.f32 %v1587_v46, %v1331_v5  ;;  %3228 = vmatmul.msk.f32.gmra.mxu1 %vm246_vm1, %v1966_v42  ;;  %3266 = vmatmul.msk.f32.gmra.mxu2 %vm246_vm1, %v1968_v56  ;;  %v2589_v42 = vld [vmem:[%s3451_s27 + $0x6e] sm:$0xff] }
 0x1ba   : > { %3304 = vmatmul.msk.f32.gmra.mxu3 %vm246_vm1, %v2278_v51  ;;  %3342 = vmatmul.msk.f32.gmra.mxu0 %vm246_vm1, %v2588_v12  ;;  %v1970_v46 = vld [vmem:[%s3451_s27 + $0x74] sm:$0xff] }
 0x1bc   : > { %v970_v16 = vpop.f32.mrf.mxu2 }
 0x1bd   : > { %v1022_v34 = vadd.f32 %v970_v16, %v697_v10  ;;  %v1280_v22 = vpop.f32.mrf.mxu3  ;;  %v2281_v10 = vld [vmem:[%s3451_s27 + $0x7d] sm:$0xff] }
 0x1be   : > { %v699_v37 = vpop.f32.mrf.mxu1 }
 0x1bf   : > { %v1332_v21 = vadd.f32 %v1280_v22, %v1022_v34  ;;  %v1593_v60 = vpop.f32.mrf.mxu0  ;;  %v700_v17 = vadd.f32 %v699_v37, %v3635_v24 }
 0x1c1   : > { %v4020_v18 = vadd.f32 %v1590_v11, %v1332_v21  ;;  %3229 = vmatmul.msk.f32.gmra.mxu1 %vm246_vm1, %v1967_v49  ;;  %3267 = vmatmul.msk.f32.gmra.mxu2 %vm246_vm1, %v1969_v39  ;;  %v2590_v49 = vld [vmem:[%s3451_s27 + $0x76] sm:$0xff] }
 0x1c2   : > { %3305 = vmatmul.msk.f32.gmra.mxu3 %vm246_vm1, %v2279_v58  ;;  %3343 = vmatmul.msk.f32.gmra.mxu0 %vm246_vm1, %v2589_v42  ;;  %v1971_v11 = vld [vmem:[%s3451_s27 + $0x7c] sm:$0xff] }
 0x1c4   : > { %v973_v28 = vpop.f32.mrf.mxu2 }
 0x1c5   : > { %v1023_v23 = vadd.f32 %v973_v28, %v700_v17  ;;  %v1283_v47 = vpop.f32.mrf.mxu3  ;;  %v2282_v17 = vld [vmem:[%s3451_s27 + $0x85] sm:$0xff] }
 0x1c6   : > { %v702_v44 = vpop.f32.mrf.mxu1 }
 0x1c7   : > { %v1333_v50 = vadd.f32 %v1283_v47, %v1023_v23  ;;  %v1596_v9 = vpop.f32.mrf.mxu0  ;;  %v703_v24 = vadd.f32 %v702_v44, %v3650_v31 }
 0x1c9   : > { %v4030_v14 = vadd.f32 %v1593_v60, %v1333_v50  ;;  %3230 = vmatmul.msk.f32.gmra.mxu1 %vm246_vm1, %v1968_v56  ;;  %3268 = vmatmul.msk.f32.gmra.mxu2 %vm246_vm1, %v1970_v46  ;;  %v2591_v56 = vld [vmem:[%s3451_s27 + $0x7e] sm:$0xff] }
 0x1ca   : > { %3306 = vmatmul.msk.f32.gmra.mxu3 %vm246_vm1, %v2280_v1  ;;  %3344 = vmatmul.msk.f32.gmra.mxu0 %vm246_vm1, %v2590_v49  ;;  %v1972_v60 = vld [vmem:[%s3451_s27 + $0x84] sm:$0xff] }
 0x1cc   : > { %v976_v35 = vpop.f32.mrf.mxu2 }
 0x1cd   : > { %v1024_v30 = vadd.f32 %v976_v35, %v703_v24  ;;  %v1286_v5 = vpop.f32.mrf.mxu3  ;;  %v2283_v24 = vld [vmem:[%s3451_s27 + $0x8d] sm:$0xff] }
 0x1ce   : > { %v705_v51 = vpop.f32.mrf.mxu1 }
 0x1cf   : > { %v1334_v12 = vadd.f32 %v1286_v5, %v1024_v30  ;;  %v1599_v16 = vpop.f32.mrf.mxu0  ;;  %v706_v31 = vadd.f32 %v705_v51, %v3665_v38 }
 0x1d1   : > { %v4040_v34 = vadd.f32 %v1596_v9, %v1334_v12  ;;  %3231 = vmatmul.msk.f32.gmra.mxu1 %vm246_vm1, %v1969_v39  ;;  %3269 = vmatmul.msk.f32.gmra.mxu2 %vm246_vm1, %v1971_v11  ;;  %v2592_v39 = vld [vmem:[%s3451_s27 + $0x86] sm:$0xff] }
 0x1d2   : > { %3307 = vmatmul.msk.f32.gmra.mxu3 %vm246_vm1, %v2281_v10  ;;  %3345 = vmatmul.msk.f32.gmra.mxu0 %vm246_vm1, %v2591_v56  ;;  %v1973_v9 = vld [vmem:[%s3451_s27 + $0x8c] sm:$0xff] }
 0x1d4   : > { %v979_v22 = vpop.f32.mrf.mxu2 }
 0x1d5   : > { %v1025_v37 = vadd.f32 %v979_v22, %v706_v31  ;;  %v1289_v21 = vpop.f32.mrf.mxu3  ;;  %v2284_v31 = vld [vmem:[%s3451_s27 + $0x95] sm:$0xff] }
 0x1d6   : > { %v708_v58 = vpop.f32.mrf.mxu1 }
 0x1d7   : > { %v1335_v42 = vadd.f32 %v1289_v21, %v1025_v37  ;;  %v1602_v28 = vpop.f32.mrf.mxu0  ;;  %v709_v38 = vadd.f32 %v708_v58, %v3680_v45 }
 0x1d9   : > { %v4050_v23 = vadd.f32 %v1599_v16, %v1335_v42  ;;  %3232 = vmatmul.msk.f32.gmra.mxu1 %vm246_vm1, %v1970_v46  ;;  %3270 = vmatmul.msk.f32.gmra.mxu2 %vm246_vm1, %v1972_v60  ;;  %v2593_v46 = vld [vmem:[%s3451_s27 + $0x8e] sm:$0xff] }
 0x1da   : > { %3308 = vmatmul.msk.f32.gmra.mxu3 %vm246_vm1, %v2282_v17  ;;  %3346 = vmatmul.msk.f32.gmra.mxu0 %vm246_vm1, %v2592_v39  ;;  %v1974_v16 = vld [vmem:[%s3451_s27 + $0x94] sm:$0xff] }
 0x1dc   : > { %v982_v47 = vpop.f32.mrf.mxu2 }
 0x1dd   : > { %v1026_v44 = vadd.f32 %v982_v47, %v709_v38  ;;  %v1292_v50 = vpop.f32.mrf.mxu3  ;;  %v2285_v38 = vld [vmem:[%s3451_s27 + $0x9d] sm:$0xff] }
 0x1de   : > { %v711_v1 = vpop.f32.mrf.mxu1 }
 0x1df   : > { %v1336_v49 = vadd.f32 %v1292_v50, %v1026_v44  ;;  %v1605_v35 = vpop.f32.mrf.mxu0  ;;  %v712_v45 = vadd.f32 %v711_v1, %v3695_v52 }
 0x1e1   : > { %v4060_v30 = vadd.f32 %v1602_v28, %v1336_v49  ;;  %3233 = vmatmul.msk.f32.gmra.mxu1 %vm246_vm1, %v1971_v11  ;;  %3271 = vmatmul.msk.f32.gmra.mxu2 %vm246_vm1, %v1973_v9  ;;  %v2594_v11 = vld [vmem:[%s3451_s27 + $0x96] sm:$0xff] }
 0x1e2   : > { %3309 = vmatmul.msk.f32.gmra.mxu3 %vm246_vm1, %v2283_v24  ;;  %3347 = vmatmul.msk.f32.gmra.mxu0 %vm246_vm1, %v2593_v46  ;;  %v1975_v28 = vld [vmem:[%s3451_s27 + $0x9c] sm:$0xff] }
 0x1e4   : > { %v985_v5 = vpop.f32.mrf.mxu2 }
 0x1e5   : > { %v1027_v51 = vadd.f32 %v985_v5, %v712_v45  ;;  %v1295_v12 = vpop.f32.mrf.mxu3  ;;  %v2286_v45 = vld [vmem:[%s3451_s27 + $0xa5] sm:$0xff] }
 0x1e6   : > { %v714_v10 = vpop.f32.mrf.mxu1 }
 0x1e7   : > { %v1337_v56 = vadd.f32 %v1295_v12, %v1027_v51  ;;  %v1608_v22 = vpop.f32.mrf.mxu0  ;;  %v715_v52 = vadd.f32 %v714_v10, %v3710_v59 }
 0x1e9   : > { %v4070_v37 = vadd.f32 %v1605_v35, %v1337_v56  ;;  %3234 = vmatmul.msk.f32.gmra.mxu1 %vm246_vm1, %v1972_v60  ;;  %3272 = vmatmul.msk.f32.gmra.mxu2 %vm246_vm1, %v1974_v16  ;;  %v2595_v60 = vld [vmem:[%s3451_s27 + $0x9e] sm:$0xff] }
 0x1ea   : > { %3310 = vmatmul.msk.f32.gmra.mxu3 %vm246_vm1, %v2284_v31  ;;  %3348 = vmatmul.msk.f32.gmra.mxu0 %vm246_vm1, %v2594_v11  ;;  %v1976_v35 = vld [vmem:[%s3451_s27 + $0xa4] sm:$0xff] }
 0x1ec   : > { %v988_v21 = vpop.f32.mrf.mxu2 }
 0x1ed   : > { %v1028_v58 = vadd.f32 %v988_v21, %v715_v52  ;;  %v1298_v42 = vpop.f32.mrf.mxu3  ;;  %v4102_v52 = vld [vmem:[%s4389_s2] ss:$0 sm:$0xff] }
 0x1ee   : > { %v717_v17 = vpop.f32.mrf.mxu1 }
 0x1ef   : > { %v1338_v39 = vadd.f32 %v1298_v42, %v1028_v58  ;;  %v1611_v47 = vpop.f32.mrf.mxu0  ;;  %v718_v59 = vadd.f32 %v717_v17, %v3725_v2  ;;  %v2597_v58 = vld [vmem:[%s3451_s27 + $0xae] sm:$0xff] }
 0x1f1   : > { %v4080_v44 = vadd.f32 %v1608_v22, %v1338_v39  ;;  %3235 = vmatmul.msk.f32.gmra.mxu1 %vm246_vm1, %v1973_v9  ;;  %3273 = vmatmul.msk.f32.gmra.mxu2 %vm246_vm1, %v1975_v28  ;;  %v2596_v9 = vld [vmem:[%s3451_s27 + $0xa6] sm:$0xff] }
 0x1f2   : > { %3311 = vmatmul.msk.f32.gmra.mxu3 %vm246_vm1, %v2285_v38  ;;  %3349 = vmatmul.msk.f32.gmra.mxu0 %vm246_vm1, %v2595_v60  ;;  %v1977_v22 = vld [vmem:[%s3451_s27 + $0xac] sm:$0xff]  ;;  %v1978_v60 = vld [vmem:[%s3451_s27 + $0xb4] sm:$0xff] }
 0x1f4   : > { %v991_v50 = vpop.f32.mrf.mxu2 }
 0x1f5   : > { %v1029_v1 = vadd.f32 %v991_v50, %v718_v59  ;;  %v1301_v49 = vpop.f32.mrf.mxu3  ;;  %v2288_v50 = vld [vmem:[%s3451_s27 + $0xb5] sm:$0xff] }
 0x1f6   : > { %v1816_v24 = vpop.f32.mrf.mxu1 }
 0x1f7   : > { %v1339_v46 = vadd.f32 %v1301_v49, %v1029_v1  ;;  %v2746_v5 = vpop.f32.mrf.mxu0  ;;  %v1924_v2 = vadd.f32 %v1816_v24, %v3738_v36  ;;  %v2598_v49 = vld [vmem:[%s3451_s27 + $0xb6] sm:$0xff] }
 0x1f9   : > { %v4090_v51 = vadd.f32 %v1611_v47, %v1339_v46  ;;  %3236 = vmatmul.msk.f32.gmra.mxu1 %vm246_vm1, %v1974_v16  ;;  %3274 = vmatmul.msk.f32.gmra.mxu2 %vm246_vm1, %v1976_v35  ;;  %v2287_v16 = vld [vmem:[%s3451_s27 + $0xad] sm:$0xff] }
 0x1fa   : > { %3312 = vmatmul.msk.f32.gmra.mxu3 %vm246_vm1, %v2286_v45  ;;  %3350 = vmatmul.msk.f32.gmra.mxu0 %vm246_vm1, %v2596_v9 }
 0x1fc   : > { %v2126_v12 = vpop.f32.mrf.mxu2 }
 0x1fd   : > { %v2234_v10 = vadd.f32 %v2126_v12, %v1924_v2  ;;  %v2436_v56 = vpop.f32.mrf.mxu3  ;;  %v1979_v12 = vld [vmem:[%s3451_s27 + $0xbc] sm:$0xff] }
 0x1fe   : > { %v1819_v31 = vpop.f32.mrf.mxu1 }
 0x1ff   : > { %v2544_v11 = vadd.f32 %v2436_v56, %v2234_v10  ;;  %v2749_v21 = vpop.f32.mrf.mxu0  ;;  %v1925_v36 = vadd.f32 %v1819_v31, %v3748_v61  ;;  %v2599_v31 = vld [vmem:[%s3451_s27 + $0xbe] sm:$0xff] }
 0x201   : > { %v2854_v42 = vadd.f32 %v2746_v5, %v2544_v11  ;;  %3237 = vmatmul.msk.f32.gmra.mxu1 %vm246_vm1, %v1975_v28  ;;  %3275 = vmatmul.msk.f32.gmra.mxu2 %vm246_vm1, %v1977_v22 }
 0x202   : > { %3313 = vmatmul.msk.f32.gmra.mxu3 %vm246_vm1, %v2287_v16  ;;  %3351 = vmatmul.msk.f32.gmra.mxu0 %vm246_vm1, %v2597_v58 }
 0x203   : > { %v2894_v17 = vadd.f32 %v4102_v52, %v2854_v42 }
 0x204   : > { %v2129_v39 = vpop.f32.mrf.mxu2 }
 0x205   : > { %2931 = vst.msk [vmem:[%s4111_s13] sm:$0xff] %vm2930_vm2, %v2894_v17  ;;  %v2235_v28 = vadd.f32 %v2129_v39, %v1925_v36  ;;  %v2439_v38 = vpop.f32.mrf.mxu3  ;;  %v1980_v17 = vld [vmem:[%s3451_s27 + $0xc4] sm:$0xff] }
 0x206   : > { %v1822_v47 = vpop.f32.mrf.mxu1 }
 0x207   : > { %v2545_v59 = vadd.f32 %v2439_v38, %v2235_v28  ;;  %v2752_v1 = vpop.f32.mrf.mxu0  ;;  %v1926_v61 = vadd.f32 %v1822_v47, %v3758_v20  ;;  %v2600_v38 = vld [vmem:[%s3451_s27 + $0xc6] sm:$0xff] }
 0x209   : > { %v2855_v24 = vadd.f32 %v2749_v21, %v2545_v59  ;;  %3238 = vmatmul.msk.f32.gmra.mxu1 %vm246_vm1, %v1976_v35  ;;  %3276 = vmatmul.msk.f32.gmra.mxu2 %vm246_vm1, %v1978_v60  ;;  %v2289_v35 = vld [vmem:[%s3451_s27 + $0xbd] sm:$0xff] }
 0x20a   : > { %3314 = vmatmul.msk.f32.gmra.mxu3 %vm246_vm1, %v2288_v50  ;;  %3352 = vmatmul.msk.f32.gmra.mxu0 %vm246_vm1, %v2598_v49 }
 0x20b   : > { %v2895_v46 = vadd.f32 %v4102_v52, %v2855_v24 }
 0x20c   : > { %v2132_v45 = vpop.f32.mrf.mxu2 }
 0x20d   : > { %2932 = vst.msk [vmem:[%s4111_s13 + $0x8] sm:$0xff] %vm2930_vm2, %v2895_v46  ;;  %v2236_v5 = vadd.f32 %v2132_v45, %v1926_v61  ;;  %v2442_v9 = vpop.f32.mrf.mxu3  ;;  %v1981_v61 = vld [vmem:[%s3451_s27 + $0xcc] sm:$0xff] }
 0x20e   : > { %v1825_v2 = vpop.f32.mrf.mxu1 }
 0x20f   : > { %v2546_v10 = vadd.f32 %v2442_v9, %v2236_v5  ;;  %v2755_v56 = vpop.f32.mrf.mxu0  ;;  %v1927_v20 = vadd.f32 %v1825_v2, %v3768_v43  ;;  %v2601_v5 = vld [vmem:[%s3451_s27 + $0xce] sm:$0xff] }
 0x211   : > { %v2856_v11 = vadd.f32 %v2752_v1, %v2546_v10  ;;  %3239 = vmatmul.msk.f32.gmra.mxu1 %vm246_vm1, %v1977_v22  ;;  %3277 = vmatmul.msk.f32.gmra.mxu2 %vm246_vm1, %v1979_v12  ;;  %v2290_v22 = vld [vmem:[%s3451_s27 + $0xc5] sm:$0xff] }
 0x212   : > { %3315 = vmatmul.msk.f32.gmra.mxu3 %vm246_vm1, %v2289_v35  ;;  %3353 = vmatmul.msk.f32.gmra.mxu0 %vm246_vm1, %v2599_v31 }
 0x213   : > { %v2896_v16 = vadd.f32 %v4102_v52, %v2856_v11  ;;  %v1982_v11 = vld [vmem:[%s3451_s27 + $0xd4] sm:$0xff] }
 0x214   : > { %v2135_v21 = vpop.f32.mrf.mxu2 }
 0x215   : > { %2933 = vst.msk [vmem:[%s4111_s13 + $0x10] sm:$0xff] %vm2930_vm2, %v2896_v16  ;;  %v2237_v58 = vadd.f32 %v2135_v21, %v1927_v20  ;;  %v2445_v42 = vpop.f32.mrf.mxu3  ;;  %v2602_v21 = vld [vmem:[%s3451_s27 + $0xd6] sm:$0xff] }
 0x216   : > { %v1828_v36 = vpop.f32.mrf.mxu1 }
 0x217   : > { %v2547_v39 = vadd.f32 %v2445_v42, %v2237_v58  ;;  %v2758_v28 = vpop.f32.mrf.mxu0  ;;  %v1928_v43 = vadd.f32 %v1828_v36, %v3778_v3 }
 0x219   : > { %v2857_v47 = vadd.f32 %v2755_v56, %v2547_v39  ;;  %3240 = vmatmul.msk.f32.gmra.mxu1 %vm246_vm1, %v1978_v60  ;;  %3278 = vmatmul.msk.f32.gmra.mxu2 %vm246_vm1, %v1980_v17  ;;  %v2291_v60 = vld [vmem:[%s3451_s27 + $0xcd] sm:$0xff] }
 0x21a   : > { %3316 = vmatmul.msk.f32.gmra.mxu3 %vm246_vm1, %v2290_v22  ;;  %3354 = vmatmul.msk.f32.gmra.mxu0 %vm246_vm1, %v2600_v38  ;;  %v1983_v38 = vld [vmem:[%s3451_s27 + $0xdc] sm:$0xff] }
 0x21b   : > { %v2897_v59 = vadd.f32 %v4102_v52, %v2857_v47 }
 0x21c   : > { %v2138_v50 = vpop.f32.mrf.mxu2 }
 0x21d   : > { %2934 = vst.msk [vmem:[%s4111_s13 + $0x18] sm:$0xff] %vm2930_vm2, %v2897_v59  ;;  %v2238_v1 = vadd.f32 %v2138_v50, %v1928_v43  ;;  %v2448_v49 = vpop.f32.mrf.mxu3  ;;  %v2603_v59 = vld [vmem:[%s3451_s27 + $0xde] sm:$0xff] }
 0x21e   : > { %v1831_v24 = vpop.f32.mrf.mxu1 }
 0x21f   : > { %v2548_v46 = vadd.f32 %v2448_v49, %v2238_v1  ;;  %v2761_v45 = vpop.f32.mrf.mxu0  ;;  %v1929_v3 = vadd.f32 %v1831_v24, %v3788_v26 }
 0x221   : > { %v2858_v9 = vadd.f32 %v2758_v28, %v2548_v46  ;;  %3241 = vmatmul.msk.f32.gmra.mxu1 %vm246_vm1, %v1979_v12  ;;  %3279 = vmatmul.msk.f32.gmra.mxu2 %vm246_vm1, %v1981_v61  ;;  %v2292_v12 = vld [vmem:[%s3451_s27 + $0xd5] sm:$0xff] }
 0x222   : > { %3317 = vmatmul.msk.f32.gmra.mxu3 %vm246_vm1, %v2291_v60  ;;  %3355 = vmatmul.msk.f32.gmra.mxu0 %vm246_vm1, %v2601_v5 }
 0x223   : > { %v2898_v2 = vadd.f32 %v4102_v52, %v2858_v9 }
 0x224   : > { %v2141_v10 = vpop.f32.mrf.mxu2 }
 0x225   : > { %2935 = vst.msk [vmem:[%s4111_s13 + $0x20] sm:$0xff] %vm2930_vm2, %v2898_v2  ;;  %v2239_v35 = vadd.f32 %v2141_v10, %v1929_v3  ;;  %v2451_v56 = vpop.f32.mrf.mxu3  ;;  %v2604_v3 = vld [vmem:[%s3451_s27 + $0xe6] sm:$0xff] }
 0x226   : > { %v1834_v31 = vpop.f32.mrf.mxu1 }
 0x227   : > { %v2549_v20 = vadd.f32 %v2451_v56, %v2239_v35  ;;  %v2764_v16 = vpop.f32.mrf.mxu0  ;;  %v1930_v26 = vadd.f32 %v1834_v31, %v3798_v48 }
 0x229   : > { %v2859_v58 = vadd.f32 %v2761_v45, %v2549_v20  ;;  %3242 = vmatmul.msk.f32.gmra.mxu1 %vm246_vm1, %v1980_v17  ;;  %3280 = vmatmul.msk.f32.gmra.mxu2 %vm246_vm1, %v1982_v11  ;;  %v2293_v17 = vld [vmem:[%s3451_s27 + $0xdd] sm:$0xff] }
 0x22a   : > { %3318 = vmatmul.msk.f32.gmra.mxu3 %vm246_vm1, %v2292_v12  ;;  %3356 = vmatmul.msk.f32.gmra.mxu0 %vm246_vm1, %v2602_v21  ;;  %v1984_v45 = vld [vmem:[%s3451_s27 + $0xe4] sm:$0xff]  ;;  %v1985_v12 = vld [vmem:[%s3451_s27 + $0xec] sm:$0xff] }
 0x22b   : > { %v2899_v42 = vadd.f32 %v4102_v52, %v2859_v58  ;;  %v2605_v58 = vld [vmem:[%s3451_s27 + $0xee] sm:$0xff] }
 0x22c   : > { %v2144_v36 = vpop.f32.mrf.mxu2 }
 0x22d   : > { %2936 = vst.msk [vmem:[%s4111_s13 + $0x28] sm:$0xff] %vm2930_vm2, %v2899_v42  ;;  %v2240_v39 = vadd.f32 %v2144_v36, %v1930_v26  ;;  %v2454_v22 = vpop.f32.mrf.mxu3 }
 0x22e   : > { %v1837_v28 = vpop.f32.mrf.mxu1 }
 0x22f   : > { %v2550_v47 = vadd.f32 %v2454_v22, %v2240_v39  ;;  %v2767_v43 = vpop.f32.mrf.mxu0  ;;  %v1931_v48 = vadd.f32 %v1837_v28, %v3808_v8 }
 0x231   : > { %v2860_v50 = vadd.f32 %v2764_v16, %v2550_v47  ;;  %3243 = vmatmul.msk.f32.gmra.mxu1 %vm246_vm1, %v1981_v61  ;;  %3281 = vmatmul.msk.f32.gmra.mxu2 %vm246_vm1, %v1983_v38  ;;  %v2294_v61 = vld [vmem:[%s3451_s27 + $0xe5] sm:$0xff]  ;;  %v1986_v47 = vld [vmem:[%s3451_s27 + $0xf4] sm:$0xff] }
 0x232   : > { %3319 = vmatmul.msk.f32.gmra.mxu3 %vm246_vm1, %v2293_v17  ;;  %3357 = vmatmul.msk.f32.gmra.mxu0 %vm246_vm1, %v2603_v59  ;;  %v2606_v59 = vld [vmem:[%s3451_s27 + $0xf6] sm:$0xff] }
 0x233   : > { %v2900_v1 = vadd.f32 %v4102_v52, %v2860_v50 }
 0x234   : > { %v2147_v49 = vpop.f32.mrf.mxu2 }
 0x235   : > { %2937 = vst.msk [vmem:[%s4111_s13 + $0x30] sm:$0xff] %vm2930_vm2, %v2900_v1  ;;  %v2241_v24 = vadd.f32 %v2147_v49, %v1931_v48  ;;  %v2457_v46 = vpop.f32.mrf.mxu3 }
 0x236   : > { %v1840_v60 = vpop.f32.mrf.mxu1 }
 0x237   : > { %v2551_v5 = vadd.f32 %v2457_v46, %v2241_v24  ;;  %v2770_v9 = vpop.f32.mrf.mxu0  ;;  %v1932_v8 = vadd.f32 %v1840_v60, %v3818_v33  ;;  %v1987_v60 = vld [vmem:[%s3451_s27 + $0xfc] sm:$0xff] }
 0x239   : > { %v2861_v2 = vadd.f32 %v2767_v43, %v2551_v5  ;;  %3244 = vmatmul.msk.f32.gmra.mxu1 %vm246_vm1, %v1982_v11  ;;  %3282 = vmatmul.msk.f32.gmra.mxu2 %vm246_vm1, %v1984_v45  ;;  %v2295_v11 = vld [vmem:[%s3451_s27 + $0xed] sm:$0xff] }
 0x23a   : > { %3320 = vmatmul.msk.f32.gmra.mxu3 %vm246_vm1, %v2294_v61  ;;  %3358 = vmatmul.msk.f32.gmra.mxu0 %vm246_vm1, %v2604_v3 }
 0x23b   : > { %v2901_v10 = vadd.f32 %v4102_v52, %v2861_v2 }
 0x23c   : > { %v2150_v35 = vpop.f32.mrf.mxu2 }
 0x23d   : > { %2938 = vst.msk [vmem:[%s4111_s13 + $0x38] sm:$0xff] %vm2930_vm2, %v2901_v10  ;;  %v2242_v56 = vadd.f32 %v2150_v35, %v1932_v8  ;;  %v2460_v31 = vpop.f32.mrf.mxu3 }
 0x23e   : > { %v1843_v20 = vpop.f32.mrf.mxu1 }
 0x23f   : > { %v2552_v16 = vadd.f32 %v2460_v31, %v2242_v56  ;;  %v2773_v21 = vpop.f32.mrf.mxu0  ;;  %v1933_v33 = vadd.f32 %v1843_v20, %v3828_v55  ;;  %v1988_v31 = vld [vmem:[%s3451_s27 + $0x104] sm:$0xff] }
 0x241   : > { %v2862_v26 = vadd.f32 %v2770_v9, %v2552_v16  ;;  %3245 = vmatmul.msk.f32.gmra.mxu1 %vm246_vm1, %v1983_v38  ;;  %3283 = vmatmul.msk.f32.gmra.mxu2 %vm246_vm1, %v1985_v12  ;;  %v2296_v38 = vld [vmem:[%s3451_s27 + $0xf5] sm:$0xff]  ;;  %v2607_v9 = vld [vmem:[%s3451_s27 + $0xfe] sm:$0xff] }
 0x242   : > { %3321 = vmatmul.msk.f32.gmra.mxu3 %vm246_vm1, %v2295_v11  ;;  %3359 = vmatmul.msk.f32.gmra.mxu0 %vm246_vm1, %v2605_v58  ;;  %v2608_v11 = vld [vmem:[%s3451_s27 + $0x106] sm:$0xff] }
 0x243   : > { %v2902_v42 = vadd.f32 %v4102_v52, %v2862_v26 }
 0x244   : > { %v2153_v36 = vpop.f32.mrf.mxu2 }
 0x245   : > { %2939 = vst.msk [vmem:[%s4111_s13 + $0x40] sm:$0xff] %vm2930_vm2, %v2902_v42  ;;  %v2243_v39 = vadd.f32 %v2153_v36, %v1933_v33  ;;  %v2463_v22 = vpop.f32.mrf.mxu3 }
 0x246   : > { %v1846_v28 = vpop.f32.mrf.mxu1 }
 0x247   : > { %v2553_v17 = vadd.f32 %v2463_v22, %v2243_v39  ;;  %v2776_v43 = vpop.f32.mrf.mxu0  ;;  %v1934_v55 = vadd.f32 %v1846_v28, %v3838_v15  ;;  %v1989_v39 = vld [vmem:[%s3451_s27 + $0x10c] sm:$0xff] }
 0x248   : > { %v2299_v28 = vld [vmem:[%s3451_s27 + $0x10d] sm:$0xff] }
 0x249   : > { %v2863_v50 = vadd.f32 %v2773_v21, %v2553_v17  ;;  %3246 = vmatmul.msk.f32.gmra.mxu1 %vm246_vm1, %v1984_v45  ;;  %3284 = vmatmul.msk.f32.gmra.mxu2 %vm246_vm1, %v1986_v47  ;;  %v2297_v45 = vld [vmem:[%s3451_s27 + $0xfd] sm:$0xff]  ;;  %v2609_v17 = vld [vmem:[%s3451_s27 + $0x10e] sm:$0xff] }
 0x24a   : > { %3322 = vmatmul.msk.f32.gmra.mxu3 %vm246_vm1, %v2296_v38  ;;  %3360 = vmatmul.msk.f32.gmra.mxu0 %vm246_vm1, %v2606_v59 }
 0x24b   : > { %v2903_v48 = vadd.f32 %v4102_v52, %v2863_v50 }
 0x24c   : > { %v2156_v1 = vpop.f32.mrf.mxu2 }
 0x24d   : > { %2940 = vst.msk [vmem:[%s4111_s13 + $0x48] sm:$0xff] %vm2930_vm2, %v2903_v48  ;;  %v2244_v49 = vadd.f32 %v2156_v1, %v1934_v55  ;;  %v2466_v24 = vpop.f32.mrf.mxu3  ;;  %v1990_v1 = vld [vmem:[%s3451_s27 + $0x114] sm:$0xff] }
 0x24e   : > { %v1849_v46 = vpop.f32.mrf.mxu1 }
 0x24f   : > { %v2554_v5 = vadd.f32 %v2466_v24, %v2244_v49  ;;  %v2779_v61 = vpop.f32.mrf.mxu0  ;;  %v1935_v15 = vadd.f32 %v1849_v46, %v3848_v40  ;;  %v2300_v24 = vld [vmem:[%s3451_s27 + $0x115] sm:$0xff] }
 0x251   : > { %v2864_v3 = vadd.f32 %v2776_v43, %v2554_v5  ;;  %3247 = vmatmul.msk.f32.gmra.mxu1 %vm246_vm1, %v1985_v12  ;;  %3285 = vmatmul.msk.f32.gmra.mxu2 %vm246_vm1, %v1987_v60  ;;  %v2298_v12 = vld [vmem:[%s3451_s27 + $0x105] sm:$0xff] }
 0x252   : > { %3323 = vmatmul.msk.f32.gmra.mxu3 %vm246_vm1, %v2297_v45  ;;  %3361 = vmatmul.msk.f32.gmra.mxu0 %vm246_vm1, %v2607_v9 }
 0x253   : > { %v2904_v2 = vadd.f32 %v4102_v52, %v2864_v3 }
 0x254   : > { %v2159_v8 = vpop.f32.mrf.mxu2 }
 0x255   : > { %2941 = vst.msk [vmem:[%s4111_s13 + $0x50] sm:$0xff] %vm2930_vm2, %v2904_v2  ;;  %v2245_v10 = vadd.f32 %v2159_v8, %v1935_v15  ;;  %v2469_v35 = vpop.f32.mrf.mxu3  ;;  %v1991_v2 = vld [vmem:[%s3451_s27 + $0x11c] sm:$0xff] }
 0x256   : > { %v1852_v56 = vpop.f32.mrf.mxu1 }
 0x257   : > { %v2555_v20 = vadd.f32 %v2469_v35, %v2245_v10  ;;  %v2782_v16 = vpop.f32.mrf.mxu0  ;;  %v1936_v40 = vadd.f32 %v1852_v56, %v3858_v62  ;;  %v2301_v10 = vld [vmem:[%s3451_s27 + $0x11d] sm:$0xff] }
 0x258   : > { %v2611_v56 = vld [vmem:[%s3451_s27 + $0x11e] sm:$0xff] }
 0x259   : > { %v2865_v21 = vadd.f32 %v2779_v61, %v2555_v20  ;;  %3248 = vmatmul.msk.f32.gmra.mxu1 %vm246_vm1, %v1986_v47  ;;  %3286 = vmatmul.msk.f32.gmra.mxu2 %vm246_vm1, %v1988_v31 }
 0x25a   : > { %3324 = vmatmul.msk.f32.gmra.mxu3 %vm246_vm1, %v2298_v12  ;;  %3362 = vmatmul.msk.f32.gmra.mxu0 %vm246_vm1, %v2608_v11 }
 0x25b   : > { %v2905_v58 = vadd.f32 %v4102_v52, %v2865_v21 }
 0x25c   : > { %v2162_v26 = vpop.f32.mrf.mxu2 }
 0x25d   : > { %2942 = vst.msk [vmem:[%s4111_s13 + $0x58] sm:$0xff] %vm2930_vm2, %v2905_v58  ;;  %v2246_v33 = vadd.f32 %v2162_v26, %v1936_v40  ;;  %v2472_v42 = vpop.f32.mrf.mxu3  ;;  %v1992_v40 = vld [vmem:[%s3451_s27 + $0x124] sm:$0xff] }
 0x25e   : > { %v1855_v36 = vpop.f32.mrf.mxu1  ;;  %v2302_v26 = vld [vmem:[%s3451_s27 + $0x125] sm:$0xff] }
 0x25f   : > { %v2556_v22 = vadd.f32 %v2472_v42, %v2246_v33  ;;  %v2785_v47 = vpop.f32.mrf.mxu0  ;;  %v1937_v62 = vadd.f32 %v1855_v36, %v3868_v6  ;;  %v2612_v42 = vld [vmem:[%s3451_s27 + $0x126] sm:$0xff] }
 0x261   : > { %v2866_v38 = vadd.f32 %v2782_v16, %v2556_v22  ;;  %3249 = vmatmul.msk.f32.gmra.mxu1 %vm246_vm1, %v1987_v60  ;;  %3287 = vmatmul.msk.f32.gmra.mxu2 %vm246_vm1, %v1989_v39  ;;  %v2610_v60 = vld [vmem:[%s3451_s27 + $0x116] sm:$0xff] }
 0x262   : > { %3325 = vmatmul.msk.f32.gmra.mxu3 %vm246_vm1, %v2299_v28  ;;  %3363 = vmatmul.msk.f32.gmra.mxu0 %vm246_vm1, %v2609_v17 }
 0x263   : > { %v2906_v43 = vadd.f32 %v4102_v52, %v2866_v38  ;;  %v1993_v38 = vld [vmem:[%s3451_s27 + $0x12c] sm:$0xff] }
 0x264   : > { %v2165_v59 = vpop.f32.mrf.mxu2 }
 0x265   : > { %2943 = vst.msk [vmem:[%s4111_s13 + $0x60] sm:$0xff] %vm2930_vm2, %v2906_v43  ;;  %v2247_v50 = vadd.f32 %v2165_v59, %v1937_v62  ;;  %v2475_v55 = vpop.f32.mrf.mxu3  ;;  %v2303_v43 = vld [vmem:[%s3451_s27 + $0x12d] sm:$0xff] }
 0x266   : > { %v1858_v48 = vpop.f32.mrf.mxu1 }
 0x267   : > { %v2557_v49 = vadd.f32 %v2475_v55, %v2247_v50  ;;  %v2788_v46 = vpop.f32.mrf.mxu0  ;;  %v1938_v6 = vadd.f32 %v1858_v48, %v3878_v29  ;;  %v2613_v50 = vld [vmem:[%s3451_s27 + $0x12e] sm:$0xff] }
 0x269   : > { %v2867_v5 = vadd.f32 %v2785_v47, %v2557_v49  ;;  %3250 = vmatmul.msk.f32.gmra.mxu1 %vm246_vm1, %v1988_v31  ;;  %3288 = vmatmul.msk.f32.gmra.mxu2 %vm246_vm1, %v1990_v1 }
 0x26a   : > { %3326 = vmatmul.msk.f32.gmra.mxu3 %vm246_vm1, %v2300_v24  ;;  %3364 = vmatmul.msk.f32.gmra.mxu0 %vm246_vm1, %v2610_v60  ;;  %v1994_v60 = vld [vmem:[%s3451_s27 + $0x134] sm:$0xff] }
 0x26b   : > { %v2907_v45 = vadd.f32 %v4102_v52, %v2867_v5 }
 0x26c   : > { %v2168_v61 = vpop.f32.mrf.mxu2 }
 0x26d   : > { %2944 = vst.msk [vmem:[%s4111_s13 + $0x68] sm:$0xff] %vm2930_vm2, %v2907_v45  ;;  %v2248_v9 = vadd.f32 %v2168_v61, %v1938_v6  ;;  %v2478_v3 = vpop.f32.mrf.mxu3  ;;  %v2304_v6 = vld [vmem:[%s3451_s27 + $0x135] sm:$0xff] }
 0x26e   : > { %v1861_v15 = vpop.f32.mrf.mxu1  ;;  %v2614_v61 = vld [vmem:[%s3451_s27 + $0x136] sm:$0xff] }
 0x26f   : > { %v2558_v8 = vadd.f32 %v2478_v3, %v2248_v9  ;;  %v2791_v35 = vpop.f32.mrf.mxu0  ;;  %v1939_v29 = vadd.f32 %v1861_v15, %v3888_v54 }
 0x271   : > { %v2868_v31 = vadd.f32 %v2788_v46, %v2558_v8  ;;  %3251 = vmatmul.msk.f32.gmra.mxu1 %vm246_vm1, %v1989_v39  ;;  %3289 = vmatmul.msk.f32.gmra.mxu2 %vm246_vm1, %v1991_v2 }
 0x272   : > { %3327 = vmatmul.msk.f32.gmra.mxu3 %vm246_vm1, %v2301_v10  ;;  %3365 = vmatmul.msk.f32.gmra.mxu0 %vm246_vm1, %v2611_v56 }
 0x273   : > { %v2908_v20 = vadd.f32 %v4102_v52, %v2868_v31  ;;  %v2305_v31 = vld [vmem:[%s3451_s27 + $0x13d] sm:$0xff] }
 0x274   : > { %v2171_v12 = vpop.f32.mrf.mxu2 }
 0x275   : > { %2945 = vst.msk [vmem:[%s4111_s13 + $0x70] sm:$0xff] %vm2930_vm2, %v2908_v20  ;;  %v2249_v16 = vadd.f32 %v2171_v12, %v1939_v29  ;;  %v2481_v11 = vpop.f32.mrf.mxu3  ;;  %v2615_v20 = vld [vmem:[%s3451_s27 + $0x13e] sm:$0xff] }
 0x276   : > { %v1864_v21 = vpop.f32.mrf.mxu1 }
 0x277   : > { %v2559_v58 = vadd.f32 %v2481_v11, %v2249_v16  ;;  %v2794_v33 = vpop.f32.mrf.mxu0  ;;  %v1940_v54 = vadd.f32 %v1864_v21, %v3898_v13 }
 0x279   : > { %v2869_v36 = vadd.f32 %v2791_v35, %v2559_v58  ;;  %3252 = vmatmul.msk.f32.gmra.mxu1 %vm246_vm1, %v1990_v1  ;;  %3290 = vmatmul.msk.f32.gmra.mxu2 %vm246_vm1, %v1992_v40  ;;  %v1995_v35 = vld [vmem:[%s3451_s27 + $0x13c] sm:$0xff] }
 0x27a   : > { %3328 = vmatmul.msk.f32.gmra.mxu3 %vm246_vm1, %v2302_v26  ;;  %3366 = vmatmul.msk.f32.gmra.mxu0 %vm246_vm1, %v2612_v42 }
 0x27b   : > { %v2909_v39 = vadd.f32 %v4102_v52, %v2869_v36 }
 0x27c   : > { %v2174_v22 = vpop.f32.mrf.mxu2 }
 0x27d   : > { %2946 = vst.msk [vmem:[%s4111_s13 + $0x78] sm:$0xff] %vm2930_vm2, %v2909_v39  ;;  %v2250_v28 = vadd.f32 %v2174_v22, %v1940_v54  ;;  %v2484_v47 = vpop.f32.mrf.mxu3 }
 0x27e   : > { %v1867_v17 = vpop.f32.mrf.mxu1 }
 0x27f   : > { %v2560_v62 = vadd.f32 %v2484_v47, %v2250_v28  ;;  %v2797_v59 = vpop.f32.mrf.mxu0  ;;  %v1941_v13 = vadd.f32 %v1867_v17, %v3908_v7 }
 0x281   : > { %v2870_v55 = vadd.f32 %v2794_v33, %v2560_v62  ;;  %3253 = vmatmul.msk.f32.gmra.mxu1 %vm246_vm1, %v1991_v2  ;;  %3291 = vmatmul.msk.f32.gmra.mxu2 %vm246_vm1, %v1993_v38 }
 0x282   : > { %3329 = vmatmul.msk.f32.gmra.mxu3 %vm246_vm1, %v2303_v43  ;;  %3367 = vmatmul.msk.f32.gmra.mxu0 %vm246_vm1, %v2613_v50 }
 0x283   : > { %v2910_v48 = vadd.f32 %v4102_v52, %v2870_v55 }
 0x284   : > { %v2177_v1 = vpop.f32.mrf.mxu2 }
 0x285   : > { %2947 = vst.msk [vmem:[%s4111_s13 + $0x80] sm:$0xff] %vm2930_vm2, %v2910_v48  ;;  %v2251_v49 = vadd.f32 %v2177_v1, %v1941_v13  ;;  %v2487_v24 = vpop.f32.mrf.mxu3 }
 0x286   : > { %v1870_v46 = vpop.f32.mrf.mxu1 }
 0x287   : > { %v2561_v5 = vadd.f32 %v2487_v24, %v2251_v49  ;;  %v2800_v45 = vpop.f32.mrf.mxu0  ;;  %v1942_v7 = vadd.f32 %v1870_v46, %v3918_v25 }
 0x289   : > { %v2871_v9 = vadd.f32 %v2797_v59, %v2561_v5  ;;  %3254 = vmatmul.msk.f32.gmra.mxu1 %vm246_vm1, %v1992_v40  ;;  %3292 = vmatmul.msk.f32.gmra.mxu2 %vm246_vm1, %v1994_v60 }
 0x28a   : > { %3330 = vmatmul.msk.f32.gmra.mxu3 %vm246_vm1, %v2304_v6  ;;  %3368 = vmatmul.msk.f32.gmra.mxu0 %vm246_vm1, %v2614_v61 }
 0x28b   : > { %v2911_v3 = vadd.f32 %v4102_v52, %v2871_v9 }
 0x28c   : > { %v2180_v15 = vpop.f32.mrf.mxu2 }
 0x28d   : > { %2948 = vst.msk [vmem:[%s4111_s13 + $0x88] sm:$0xff] %vm2930_vm2, %v2911_v3  ;;  %v2252_v2 = vadd.f32 %v2180_v15, %v1942_v7  ;;  %v2490_v8 = vpop.f32.mrf.mxu3 }
 0x28e   : > { %v1873_v10 = vpop.f32.mrf.mxu1 }
 0x28f   : > { %v2562_v56 = vadd.f32 %v2490_v8, %v2252_v2  ;;  %v2803_v29 = vpop.f32.mrf.mxu0  ;;  %v1943_v25 = vadd.f32 %v1873_v10, %v3929_v32 }
 0x291   : > { %v2872_v12 = vadd.f32 %v2800_v45, %v2562_v56  ;;  %3255 = vmatmul.msk.f32.gmra.mxu1 %vm246_vm1, %v1993_v38  ;;  %3293 = vmatmul.msk.f32.gmra.mxu2 %vm246_vm1, %v1995_v35 }
 0x292   : > { %3331 = vmatmul.msk.f32.gmra.mxu3 %vm246_vm1, %v2305_v31  ;;  %3369 = vmatmul.msk.f32.gmra.mxu0 %vm246_vm1, %v2615_v20 }
 0x293   : > { %v2912_v16 = vadd.f32 %v4102_v52, %v2872_v12 }
 0x294   : > { %v2183_v11 = vpop.f32.mrf.mxu2 }
 0x295   : > { %2949 = vst.msk [vmem:[%s4111_s13 + $0x90] sm:$0xff] %vm2930_vm2, %v2912_v16  ;;  %v2253_v21 = vadd.f32 %v2183_v11, %v1943_v25  ;;  %v2493_v40 = vpop.f32.mrf.mxu3 }
 0x296   : > { %v1876_v58 = vpop.f32.mrf.mxu1 }
 0x297   : > { %v2563_v26 = vadd.f32 %v2493_v40, %v2253_v21  ;;  %v2806_v33 = vpop.f32.mrf.mxu0  ;;  %v1944_v36 = vadd.f32 %v1876_v58, %v3940_v57 }
 0x299   : > { %v2873_v42 = vadd.f32 %v2803_v29, %v2563_v26 }
 0x29b   : > { %v2913_v54 = vadd.f32 %v4102_v52, %v2873_v42 }
 0x29c   : > { %v2186_v39 = vpop.f32.mrf.mxu2 }
 0x29d   : > { %2950 = vst.msk [vmem:[%s4111_s13 + $0x98] sm:$0xff] %vm2930_vm2, %v2913_v54  ;;  %v2254_v32 = vadd.f32 %v2186_v39, %v1944_v36  ;;  %v2496_v22 = vpop.f32.mrf.mxu3 }
 0x29e   : > { %v1879_v28 = vpop.f32.mrf.mxu1 }
 0x29f   : > { %v2564_v47 = vadd.f32 %v2496_v22, %v2254_v32  ;;  %v2809_v17 = vpop.f32.mrf.mxu0  ;;  %v1945_v62 = vadd.f32 %v1879_v28, %v3950_v19 }
 0x2a1   : > { %v2874_v38 = vadd.f32 %v2806_v33, %v2564_v47 }
 0x2a3   : > { %v2914_v43 = vadd.f32 %v4102_v52, %v2874_v38 }
 0x2a4   : > { %v2189_v59 = vpop.f32.mrf.mxu2 }
 0x2a5   : > { %2951 = vst.msk [vmem:[%s4111_s13 + $0xa0] sm:$0xff] %vm2930_vm2, %v2914_v43  ;;  %v2255_v57 = vadd.f32 %v2189_v59, %v1945_v62  ;;  %v2499_v50 = vpop.f32.mrf.mxu3 }
 0x2a6   : > { %v1882_v55 = vpop.f32.mrf.mxu1 }
 0x2a7   : > { %v2565_v13 = vadd.f32 %v2499_v50, %v2255_v57  ;;  %v2812_v48 = vpop.f32.mrf.mxu0  ;;  %v1946_v49 = vadd.f32 %v1882_v55, %v3960_v41 }
 0x2a9   : > { %v2875_v1 = vadd.f32 %v2809_v17, %v2565_v13 }
 0x2ab   : > { %v2915_v24 = vadd.f32 %v4102_v52, %v2875_v1 }
 0x2ac   : > { %v2192_v46 = vpop.f32.mrf.mxu2 }
 0x2ad   : > { %2952 = vst.msk [vmem:[%s4111_s13 + $0xa8] sm:$0xff] %vm2930_vm2, %v2915_v24  ;;  %v2256_v19 = vadd.f32 %v2192_v46, %v1946_v49  ;;  %v2502_v60 = vpop.f32.mrf.mxu3 }
 0x2ae   : > { %v1885_v5 = vpop.f32.mrf.mxu1 }
 0x2af   : > { %v2566_v6 = vadd.f32 %v2502_v60, %v2256_v19  ;;  %v2815_v45 = vpop.f32.mrf.mxu0  ;;  %v1947_v9 = vadd.f32 %v1885_v5, %v3970_v0 }
 0x2b1   : > { %v2876_v61 = vadd.f32 %v2812_v48, %v2566_v6 }
 0x2b3   : > { %v2916_v7 = vadd.f32 %v4102_v52, %v2876_v61 }
 0x2b4   : > { %v2195_v3 = vpop.f32.mrf.mxu2 }
 0x2b5   : > { %2953 = vst.msk [vmem:[%s4111_s13 + $0xb0] sm:$0xff] %vm2930_vm2, %v2916_v7  ;;  %v2257_v41 = vadd.f32 %v2195_v3, %v1947_v9  ;;  %v2505_v15 = vpop.f32.mrf.mxu3 }
 0x2b6   : > { %v1888_v2 = vpop.f32.mrf.mxu1 }
 0x2b7   : > { %v2567_v8 = vadd.f32 %v2505_v15, %v2257_v41  ;;  %v2818_v10 = vpop.f32.mrf.mxu0  ;;  %v1948_v56 = vadd.f32 %v1888_v2, %v3980_v53 }
 0x2b9   : > { %v2877_v35 = vadd.f32 %v2815_v45, %v2567_v8 }
 0x2bb   : > { %v2917_v31 = vadd.f32 %v4102_v52, %v2877_v35 }
 0x2bc   : > { %v2198_v29 = vpop.f32.mrf.mxu2 }
 0x2bd   : > { %2954 = vst.msk [vmem:[%s4111_s13 + $0xb8] sm:$0xff] %vm2930_vm2, %v2917_v31  ;;  %v2258_v0 = vadd.f32 %v2198_v29, %v1948_v56  ;;  %v2508_v20 = vpop.f32.mrf.mxu3 }
 0x2be   : > { %v1891_v12 = vpop.f32.mrf.mxu1 }
 0x2bf   : > { %v2568_v25 = vadd.f32 %v2508_v20, %v2258_v0  ;;  %v2821_v16 = vpop.f32.mrf.mxu0  ;;  %v1949_v21 = vadd.f32 %v1891_v12, %v3990_v63 }
 0x2c1   : > { %v2878_v11 = vadd.f32 %v2818_v10, %v2568_v25 }
 0x2c3   : > { %v2918_v40 = vadd.f32 %v4102_v52, %v2878_v11 }
 0x2c4   : > { %v2201_v58 = vpop.f32.mrf.mxu2 }
 0x2c5   : > { %2955 = vst.msk [vmem:[%s4111_s13 + $0xc0] sm:$0xff] %vm2930_vm2, %v2918_v40  ;;  %v2259_v53 = vadd.f32 %v2201_v58, %v1949_v21  ;;  %v2511_v26 = vpop.f32.mrf.mxu3 }
 0x2c6   : > { %v1894_v33 = vpop.f32.mrf.mxu1 }
 0x2c7   : > { %v2569_v42 = vadd.f32 %v2511_v26, %v2259_v53  ;;  %v2824_v36 = vpop.f32.mrf.mxu0  ;;  %v1950_v39 = vadd.f32 %v1894_v33, %v4000_v4 }
 0x2c9   : > { %v2879_v54 = vadd.f32 %v2821_v16, %v2569_v42 }
 0x2cb   : > { %v2919_v32 = vadd.f32 %v4102_v52, %v2879_v54 }
 0x2cc   : > { %v2204_v22 = vpop.f32.mrf.mxu2 }
 0x2cd   : > { %2956 = vst.msk [vmem:[%s4111_s13 + $0xc8] sm:$0xff] %vm2930_vm2, %v2919_v32  ;;  %v2260_v63 = vadd.f32 %v2204_v22, %v1950_v39  ;;  %v2514_v28 = vpop.f32.mrf.mxu3 }
 0x2ce   : > { %v1897_v47 = vpop.f32.mrf.mxu1 }
 0x2cf   : > { %v2570_v17 = vadd.f32 %v2514_v28, %v2260_v63  ;;  %v2827_v38 = vpop.f32.mrf.mxu0  ;;  %v1951_v43 = vadd.f32 %v1897_v47, %v4010_v27 }
 0x2d1   : > { %v2880_v62 = vadd.f32 %v2824_v36, %v2570_v17 }
 0x2d3   : > { %v2920_v59 = vadd.f32 %v4102_v52, %v2880_v62 }
 0x2d4   : > { %v2207_v57 = vpop.f32.mrf.mxu2 }
 0x2d5   : > { %2957 = vst.msk [vmem:[%s4111_s13 + $0xd0] sm:$0xff] %vm2930_vm2, %v2920_v59  ;;  %v2261_v4 = vadd.f32 %v2207_v57, %v1951_v43  ;;  %v2517_v50 = vpop.f32.mrf.mxu3 }
 0x2d6   : > { %v1900_v55 = vpop.f32.mrf.mxu1 }
 0x2d7   : > { %v2571_v13 = vadd.f32 %v2517_v50, %v2261_v4  ;;  %v2830_v48 = vpop.f32.mrf.mxu0  ;;  %v1952_v49 = vadd.f32 %v1900_v55, %v4020_v18 }
 0x2d9   : > { %v2881_v1 = vadd.f32 %v2827_v38, %v2571_v13 }
 0x2db   : > { %v2921_v24 = vadd.f32 %v4102_v52, %v2881_v1 }
 0x2dc   : > { %v2210_v46 = vpop.f32.mrf.mxu2 }
 0x2dd   : > { %2958 = vst.msk [vmem:[%s4111_s13 + $0xd8] sm:$0xff] %vm2930_vm2, %v2921_v24  ;;  %v2262_v27 = vadd.f32 %v2210_v46, %v1952_v49  ;;  %v2520_v19 = vpop.f32.mrf.mxu3 }
 0x2de   : > { %v1903_v60 = vpop.f32.mrf.mxu1 }
 0x2df   : > { %v2572_v5 = vadd.f32 %v2520_v19, %v2262_v27  ;;  %v2833_v6 = vpop.f32.mrf.mxu0  ;;  %v1953_v61 = vadd.f32 %v1903_v60, %v4030_v14 }
 0x2e1   : > { %v2882_v45 = vadd.f32 %v2830_v48, %v2572_v5 }
 0x2e3   : > { %v2922_v9 = vadd.f32 %v4102_v52, %v2882_v45 }
 0x2e4   : > { %v2213_v7 = vpop.f32.mrf.mxu2 }
 0x2e5   : > { %2959 = vst.msk [vmem:[%s4111_s13 + $0xe0] sm:$0xff] %vm2930_vm2, %v2922_v9  ;;  %v2263_v18 = vadd.f32 %v2213_v7, %v1953_v61  ;;  %v2523_v3 = vpop.f32.mrf.mxu3 }
 0x2e6   : > { %v1906_v41 = vpop.f32.mrf.mxu1 }
 0x2e7   : > { %v2573_v15 = vadd.f32 %v2523_v3, %v2263_v18  ;;  %v2836_v2 = vpop.f32.mrf.mxu0  ;;  %v1954_v10 = vadd.f32 %v1906_v41, %v4040_v34 }
 0x2e9   : > { %v2883_v8 = vadd.f32 %v2833_v6, %v2573_v15 }
 0x2eb   : > { %v2923_v35 = vadd.f32 %v4102_v52, %v2883_v8 }
 0x2ec   : > { %v2216_v56 = vpop.f32.mrf.mxu2 }
 0x2ed   : > { %2960 = vst.msk [vmem:[%s4111_s13 + $0xe8] sm:$0xff] %vm2930_vm2, %v2923_v35  ;;  %v2264_v14 = vadd.f32 %v2216_v56, %v1954_v10  ;;  %v2526_v31 = vpop.f32.mrf.mxu3 }
 0x2ee   : > { %v1909_v29 = vpop.f32.mrf.mxu1 }
 0x2ef   : > { %v2574_v0 = vadd.f32 %v2526_v31, %v2264_v14  ;;  %v2839_v20 = vpop.f32.mrf.mxu0  ;;  %v1955_v25 = vadd.f32 %v1909_v29, %v4050_v23 }
 0x2f1   : > { %v2884_v12 = vadd.f32 %v2836_v2, %v2574_v0 }
 0x2f3   : > { %v2924_v16 = vadd.f32 %v4102_v52, %v2884_v12 }
 0x2f4   : > { %v2219_v11 = vpop.f32.mrf.mxu2 }
 0x2f5   : > { %2961 = vst.msk [vmem:[%s4111_s13 + $0xf0] sm:$0xff] %vm2930_vm2, %v2924_v16  ;;  %v2265_v34 = vadd.f32 %v2219_v11, %v1955_v25  ;;  %v2529_v21 = vpop.f32.mrf.mxu3 }
 0x2f6   : > { %v1912_v40 = vpop.f32.mrf.mxu1 }
 0x2f7   : > { %v2575_v58 = vadd.f32 %v2529_v21, %v2265_v34  ;;  %v2842_v53 = vpop.f32.mrf.mxu0  ;;  %v1956_v33 = vadd.f32 %v1912_v40, %v4060_v30 }
 0x2f9   : > { %v2885_v26 = vadd.f32 %v2839_v20, %v2575_v58 }
 0x2fb   : > { %v2925_v42 = vadd.f32 %v4102_v52, %v2885_v26 }
 0x2fc   : > { %v2222_v36 = vpop.f32.mrf.mxu2 }
 0x2fd   : > { %2962 = vst.msk [vmem:[%s4111_s13 + $0xf8] sm:$0xff] %vm2930_vm2, %v2925_v42  ;;  %v2266_v23 = vadd.f32 %v2222_v36, %v1956_v33  ;;  %v2532_v54 = vpop.f32.mrf.mxu3 }
 0x2fe   : > { %v1915_v39 = vpop.f32.mrf.mxu1 }
 0x2ff   : > { %v2576_v32 = vadd.f32 %v2532_v54, %v2266_v23  ;;  %v2845_v63 = vpop.f32.mrf.mxu0  ;;  %v1957_v28 = vadd.f32 %v1915_v39, %v4070_v37 }
 0x301   : > { %v2886_v22 = vadd.f32 %v2842_v53, %v2576_v32 }
 0x303   : > { %v2926_v47 = vadd.f32 %v4102_v52, %v2886_v22 }
 0x304   : > { %v2225_v17 = vpop.f32.mrf.mxu2 }
 0x305   : > { %2963 = vst.msk [vmem:[%s4111_s13 + $0x100] sm:$0xff] %vm2930_vm2, %v2926_v47  ;;  %v2267_v30 = vadd.f32 %v2225_v17, %v1957_v28  ;;  %v2535_v38 = vpop.f32.mrf.mxu3 }
 0x306   : > { %v1918_v62 = vpop.f32.mrf.mxu1 }
 0x307   : > { %v2577_v43 = vadd.f32 %v2535_v38, %v2267_v30  ;;  %v1958_v57 = vadd.f32 %v1918_v62, %v4080_v44  ;;  %v2848_v55 = vpop.f32.mrf.mxu0 }
 0x309   : > { %v2887_v59 = vadd.f32 %v2845_v63, %v2577_v43 }
 0x30b   : > { %v2927_v4 = vadd.f32 %v4102_v52, %v2887_v59 }
 0x30c   : > { %v2228_v50 = vpop.f32.mrf.mxu2 }
 0x30d   : > { %2964 = vst.msk [vmem:[%s4111_s13 + $0x108] sm:$0xff] %vm2930_vm2, %v2927_v4  ;;  %v2268_v37 = vadd.f32 %v2228_v50, %v1958_v57  ;;  %v2538_v13 = vpop.f32.mrf.mxu3 }
 0x30e   : > { %v1921_v1 = vpop.f32.mrf.mxu1 }
 0x30f   : > { %v2578_v48 = vadd.f32 %v2538_v13, %v2268_v37  ;;  %v1959_v24 = vadd.f32 %v1921_v1, %v4090_v51  ;;  %v2851_v60 = vpop.f32.mrf.mxu0 }
 0x311   : > { %v2888_v49 = vadd.f32 %v2848_v55, %v2578_v48 }
 0x313   : > { %v2928_v46 = vadd.f32 %v4102_v52, %v2888_v49 }
 0x314   : > { %v2231_v27 = vpop.f32.mrf.mxu2 }
 0x315   : > { %2965 = vst.msk [vmem:[%s4111_s13 + $0x110] sm:$0xff] %vm2930_vm2, %v2928_v46  ;;  %v2269_v44 = vadd.f32 %v2231_v27, %v1959_v24  ;;  %v2541_v19 = vpop.f32.mrf.mxu3 }
 0x317   : > { %v2579_v5 = vadd.f32 %v2541_v19, %v2269_v44 }
 0x319   : > { %v2889_v6 = vadd.f32 %v2851_v60, %v2579_v5 }
 0x31b   : > { %v2929_v45 = vadd.f32 %v4102_v52, %v2889_v6 }
 0x31d   : > { %2966 = vst.msk [vmem:[%s4111_s13 + $0x118] sm:$0xff] %vm2930_vm2, %v2929_v45 }
 0x31e PF: > { %s13_s12 = sadd.s32 1, %s3392_s12  }
 0x31f   : > { %p10_p4 = scmp.ge.s32.totalorder %s13_s12, 4  }
 0x321   :  { %12 = sbr.rel (!%p10_p4) target bundleno = 1 (0x1), region = 70 }

</bundles_post_ra>
